<compile_context>
chip_gen: v7x
topology: tpu7x:2x2x1
jax: 0.10.0
libtpu: 0.0.40
codegen_flags: <defaults>
</compile_context>

<pallas_src>
import math
import numpy as np
import jax
import jax.numpy as jnp
from jax.experimental import pallas as pl
from jax.experimental.pallas import tpu as pltpu

# ---------------------------------------------------------------------------
# Model configuration (small, consistent with GatModelConfig)
# ---------------------------------------------------------------------------
B, N = 2, 16                  # batch, number of graph nodes
BN = B * N
DIM_IN = 8                    # raw node-feature dim
DIM_INITIAL = 32              # initial_transform output dim
ATTN_CFGS = [
    dict(num_heads=2, dim_in=32, dim_hidden=16, dim_out=16, dim_linear=32),
    dict(num_heads=2, dim_in=32, dim_hidden=16, dim_out=16, dim_linear=32),
]
DIM_HIDDENS = [32]
DIM_OUT = 4
NN_SCALE = 1999853.335557038
TOTAL_LINEAR = sum(c['dim_linear'] for c in ATTN_CFGS)
FINAL_DIMS = [TOTAL_LINEAR] + DIM_HIDDENS + [DIM_OUT]

NEG_INBLOCK = -1e9            # matches reference masking of invalid edges
NEG_CROSS = -1e30             # fully suppresses cross-batch (folded) entries

# ---------------------------------------------------------------------------
# Static layout of the single packed weights array (W_ROWS, W_LANES)
# ---------------------------------------------------------------------------
ENC_OFF = 0
ENC_ROWS = DIM_IN + 1                       # w0 rows + bias row

MOD_OFF = []
_r = ENC_ROWS
for _cfg in ATTN_CFGS:
    # packed per-head Wl row-slicing assumes dim_in == num_heads * dim_out
    assert _cfg['dim_in'] == _cfg['num_heads'] * _cfg['dim_out']
    MOD_OFF.append(_r)
    _r += _cfg['dim_in'] + 1                # weights rows + bias row
HEAD_OFF = _r

HEAD_LANE_OFF = []
_lo = 0
for _d in FINAL_DIMS[1:]:
    HEAD_LANE_OFF.append(_lo)
    _lo += _d
HEAD_LANE_TOTAL = _lo

_MOD_WIDTH = max(c['num_heads'] * (2 * c['dim_hidden'] + c['dim_out']) + c['dim_linear']
                 for c in ATTN_CFGS)
W_LANES = max(128, DIM_INITIAL, _MOD_WIDTH, HEAD_LANE_TOTAL)
W_ROWS = HEAD_OFF + max(FINAL_DIMS[:-1]) + 1
assert _MOD_WIDTH <= W_LANES and HEAD_LANE_TOTAL <= W_LANES and DIM_INITIAL <= W_LANES

DATA_LANES = BN + DIM_IN                    # [bias | node features]


def elu(x):
    # torch.nn.ELU(alpha=1.0); clamp before exp to avoid inf in unused branch
    return jnp.where(x > 0, x, jnp.exp(jnp.minimum(x, 0.0)) - 1.0)


# ---------------------------------------------------------------------------
# Fused kernel: initial transform + stacked attention + gather + MLP head
# ---------------------------------------------------------------------------
def gat_kernel(qidx_ref, data_ref, w_ref, out_ref):
    f32 = jnp.float32

    bias = data_ref[:, 0:BN]                     # (B*N, B*N): 0 / -1e9 / -1e30
    nf = data_ref[:, BN:BN + DIM_IN]             # (B*N, DIM_IN)

    # ---- initial_transform + ELU : (B*N, DIM_IN) @ (DIM_IN, DIM_INITIAL)
    w0 = w_ref[ENC_OFF:ENC_OFF + DIM_IN, 0:DIM_INITIAL]
    b0 = w_ref[ENC_OFF + DIM_IN:ENC_OFF + DIM_IN + 1, 0:DIM_INITIAL]
    x = elu(jnp.dot(nf, w0, preferred_element_type=f32) + b0)

    # ---- one-hot row selector for the query-node gather : (B, B*N)
    row_ids = jax.lax.broadcasted_iota(jnp.int32, (B, BN), 0)
    lane_ids = jax.lax.broadcasted_iota(jnp.int32, (B, BN), 1)
    sel = jnp.zeros((B, BN), f32)
    for b in range(B):                           # static unroll, B tiny
        tgt = b * N + qidx_ref[b]
        sel = jnp.where((row_ids == b) & (lane_ids == tgt), 1.0, sel)

    # ---- stacked attention modules (batch folded into sublanes)
    h1_acc = None          # accumulates the first final-transform matmul
    lin_off = 0
    for m, cfg in enumerate(ATTN_CFGS):
        H, dh, do = cfg['num_heads'], cfg['dim_hidden'], cfg['dim_out']
        dl, din = cfg['dim_linear'], cfg['dim_in']
        scale = 1.0 / math.sqrt(dh)
        r0 = MOD_OFF[m]
        brow = r0 + din
        qkv_cols = H * (2 * dh + do)

        # fused Q/K/V projection for all heads: one matmul
        wqkv = w_ref[r0:r0 + din, 0:qkv_cols]
        bqkv = w_ref[brow:brow + 1, 0:qkv_cols]
        qkv = jnp.dot(x, wqkv, preferred_element_type=f32) + bqkv  # (B*N, 96)

        y_pre = None
        for h in range(H):                                 # static unroll
            q = qkv[:, h * dh:(h + 1) * dh]
            k = qkv[:, H * dh + h * dh:H * dh + (h + 1) * dh]
            v = qkv[:, 2 * H * dh + h * do:2 * H * dh + (h + 1) * do]

            s = jax.lax.dot_general(q, k, (((1,), (1,)), ((), ())),
                                    preferred_element_type=f32) * scale
            s = jnp.where(bias == 0.0, s, bias)            # mask (block diag)
            s = s - jnp.max(s, axis=-1, keepdims=True)
            p = jnp.exp(s)
            denom = jnp.sum(p, axis=-1, keepdims=True)
            r = pl.reciprocal(denom, approx=True)          # EUP slot
            r = r * (2.0 - denom * r)                      # Newton -> f32 acc.
            p = p * r
            o = jnp.dot(p, v, preferred_element_type=f32)  # (B*N, do)

            # head h's slice of the module Linear (rows h*do:(h+1)*do)
            wl_h = w_ref[r0 + h * do:r0 + (h + 1) * do, qkv_cols:qkv_cols + dl]
            contrib = jnp.dot(o, wl_h, preferred_element_type=f32)
            y_pre = contrib if y_pre is None else y_pre + contrib

        bl = w_ref[brow:brow + 1, qkv_cols:qkv_cols + dl]
        y = elu(y_pre + bl)                                # (B*N, dl)
        x = y                                              # feed next module

        # gather query rows of this module's output and accumulate directly
        # into the first final-transform matmul (avoids lane-axis concat)
        vpart = jnp.dot(sel, y, preferred_element_type=f32)          # (B, dl)
        w1_m = w_ref[HEAD_OFF + lin_off:HEAD_OFF + lin_off + dl,
                     HEAD_LANE_OFF[0]:HEAD_LANE_OFF[0] + FINAL_DIMS[1]]
        part = jnp.dot(vpart, w1_m, preferred_element_type=f32)
        h1_acc = part if h1_acc is None else h1_acc + part
        lin_off += dl

    # ---- final MLP head (layer l packed at lane offset HEAD_LANE_OFF[l])
    b1 = w_ref[HEAD_OFF + FINAL_DIMS[0]:HEAD_OFF + FINAL_DIMS[0] + 1,
               HEAD_LANE_OFF[0]:HEAD_LANE_OFF[0] + FINAL_DIMS[1]]
    h = elu(h1_acc + b1)
    for l in range(1, len(FINAL_DIMS) - 1):
        din_l, dout_l = FINAL_DIMS[l], FINAL_DIMS[l + 1]
        lo = HEAD_LANE_OFF[l]
        W = w_ref[HEAD_OFF:HEAD_OFF + din_l, lo:lo + dout_l]
        bb = w_ref[HEAD_OFF + din_l:HEAD_OFF + din_l + 1, lo:lo + dout_l]
        h = elu(jnp.dot(h, W, preferred_element_type=f32) + bb)

    out_ref[...] = h * NN_SCALE


# ---------------------------------------------------------------------------
# Host-side glue: attention bias, weight packing, pallas_call wrapper
# ---------------------------------------------------------------------------
def build_attention_bias(adj, masks):
    """(B*N, B*N) block-diag bias: 0 valid, -1e9 invalid edge, -1e30 cross-batch.
    Built with pure broadcasting (no scatter) so it fuses into one XLA op."""
    valid = (adj > 0.0) & (masks[:, None, :] > 0.0)               # (B, N, N)
    inblock = jnp.where(valid, 0.0, NEG_INBLOCK).astype(jnp.float32)
    eye = jnp.eye(B, dtype=jnp.float32)[:, None, :, None]         # (B,1,B,1)
    big = eye * inblock[:, :, None, :] + (1.0 - eye) * NEG_CROSS  # (B,N,B,N)
    return big.reshape(BN, BN)


def pack_params(params):
    """Coalesce ALL weights into one (W_ROWS, W_LANES) f32 array -> 1 DMA."""
    Wp = np.zeros((W_ROWS, W_LANES), np.float32)

    # encoder
    Wp[ENC_OFF:ENC_OFF + DIM_IN, 0:DIM_INITIAL] = np.asarray(params['w0'])
    Wp[ENC_OFF + DIM_IN, 0:DIM_INITIAL] = np.asarray(params['b0'][0])

    # attention modules
    for m, (p, cfg) in enumerate(zip(params['attn'], ATTN_CFGS)):
        H, dh, do = cfg['num_heads'], cfg['dim_hidden'], cfg['dim_out']
        dl, din = cfg['dim_linear'], cfg['dim_in']
        r0 = MOD_OFF[m]
        qkv_cols = H * (2 * dh + do)
        wq = np.asarray(jnp.transpose(p['Wq'], (1, 0, 2)).reshape(din, H * dh))
        wk = np.asarray(jnp.transpose(p['Wk'], (1, 0, 2)).reshape(din, H * dh))
        wv = np.asarray(jnp.transpose(p['Wv'], (1, 0, 2)).reshape(din, H * do))
        Wp[r0:r0 + din, 0:H * dh] = wq
        Wp[r0:r0 + din, H * dh:2 * H * dh] = wk
        Wp[r0:r0 + din, 2 * H * dh:qkv_cols] = wv
        Wp[r0:r0 + din, qkv_cols:qkv_cols + dl] = np.asarray(p['Wl'])
        Wp[r0 + din, 0:H * dh] = np.asarray(p['bq']).reshape(-1)
        Wp[r0 + din, H * dh:2 * H * dh] = np.asarray(p['bk']).reshape(-1)
        Wp[r0 + din, 2 * H * dh:qkv_cols] = np.asarray(p['bv']).reshape(-1)
        Wp[r0 + din, qkv_cols:qkv_cols + dl] = np.asarray(p['bl'][0])

    # MLP head: layer l at lane offset HEAD_LANE_OFF[l], rows share HEAD_OFF
    for l, (w, b) in enumerate(zip(params['final_w'], params['final_b'])):
        din_l, dout_l = w.shape
        lo = HEAD_LANE_OFF[l]
        Wp[HEAD_OFF:HEAD_OFF + din_l, lo:lo + dout_l] = np.asarray(w)
        Wp[HEAD_OFF + din_l, lo:lo + dout_l] = np.asarray(b[0])

    return jnp.asarray(Wp)


def forward(node_features, query_idxs, masks, adj, w_packed):
    nf_flat = node_features.reshape(BN, DIM_IN)
    bias = build_attention_bias(adj, masks)
    data = jnp.concatenate([bias, nf_flat], axis=1)      # (B*N, BN+DIM_IN)

    def spec2d(shape):
        return pl.BlockSpec(shape, lambda i, qidx: (0, 0))

    return pl.pallas_call(
        gat_kernel,
        grid_spec=pltpu.PrefetchScalarGridSpec(
            num_scalar_prefetch=1,
            grid=(1,),
            in_specs=[
                spec2d((BN, DATA_LANES)),
                spec2d((W_ROWS, W_LANES)),
            ],
            out_specs=spec2d((B, DIM_OUT)),
        ),
        out_shape=jax.ShapeDtypeStruct((B, DIM_OUT), jnp.float32),
        compiler_params=pltpu.CompilerParams(dimension_semantics=("arbitrary",)),
    )(query_idxs.astype(jnp.int32), data, w_packed)


# ---------------------------------------------------------------------------
# Deterministic parameter init (synthetic, no checkpoint)
# ---------------------------------------------------------------------------
def init_params(key):
    ks = list(jax.random.split(key, 64))
    nxt = lambda: ks.pop()

    def dense(k, din, dout):
        kw, kb = jax.random.split(k)
        w = jax.random.normal(kw, (din, dout), jnp.float32) / np.sqrt(din)
        b = jax.random.normal(kb, (1, dout), jnp.float32) * 0.01
        return w, b

    w0, b0 = dense(nxt(), DIM_IN, DIM_INITIAL)

    attn_params = []
    for cfg in ATTN_CFGS:
        H, din = cfg['num_heads'], cfg['dim_in']
        dh, do, dl = cfg['dim_hidden'], cfg['dim_out'], cfg['dim_linear']

        def per_head(k, dout):
            kw, kb = jax.random.split(k)
            w = jax.random.normal(kw, (H, din, dout), jnp.float32) / np.sqrt(din)
            b = jax.random.normal(kb, (H, dout), jnp.float32) * 0.01
            return w, b

        Wq, bq = per_head(nxt(), dh)
        Wk, bk = per_head(nxt(), dh)
        Wv, bv = per_head(nxt(), do)
        Wl, bl = dense(nxt(), H * do, dl)
        attn_params.append(dict(Wq=Wq, bq=bq, Wk=Wk, bk=bk, Wv=Wv, bv=bv, Wl=Wl, bl=bl))

    final_w, final_b = [], []
    for din, dout in zip(FINAL_DIMS[:-1], FINAL_DIMS[1:]):
        w, b = dense(nxt(), din, dout)
        final_w.append(w)
        final_b.append(b)

    return dict(w0=w0, b0=b0, attn=attn_params, final_w=final_w, final_b=final_b)


# ---------------------------------------------------------------------------
# Pure-JAX reference (same math, no Pallas)
# ---------------------------------------------------------------------------
def reference_forward(nf, qidx, masks, adj, params):
    x = elu(jnp.einsum('bnd,de->bne', nf, params['w0']) + params['b0'][0])
    valid = (adj[:, None, :, :] > 0) & (masks[:, None, None, :] > 0)   # (B,1,N,N)
    outs = []
    for i, cfg in enumerate(ATTN_CFGS):
        p = params['attn'][i]
        scale = 1.0 / float(np.sqrt(cfg['dim_hidden']))
        q = jnp.einsum('bnd,hde->bhne', x, p['Wq']) + p['bq'][None, :, None, :]
        k = jnp.einsum('bnd,hde->bhne', x, p['Wk']) + p['bk'][None, :, None, :]
        v = jnp.einsum('bnd,hde->bhne', x, p['Wv']) + p['bv'][None, :, None, :]
        s = jnp.einsum('bhne,bhme->bhnm', q, k) * scale
        s = jnp.where(valid, s, NEG_INBLOCK)
        a = jax.nn.softmax(s, axis=-1)
        o = jnp.einsum('bhnm,bhme->bhne', a, v)
        o = jnp.transpose(o, (0, 2, 1, 3)).reshape(B, N, -1)
        y = elu(jnp.einsum('bnf,fg->bng', o, p['Wl']) + p['bl'][0])
        outs.append(y)
        x = y
    cat = jnp.concatenate(outs, axis=-1)
    vnf = jnp.take_along_axis(cat, qidx[:, None, None], axis=1)[:, 0, :]
    for w, b in zip(params['final_w'], params['final_b']):
        vnf = elu(vnf @ w + b[0])
    return vnf * NN_SCALE


# ---------------------------------------------------------------------------
if __name__ == "__main__":
    key = jax.random.PRNGKey(0)
    k_nf, k_adj, k_q, k_p = jax.random.split(key, 4)

    node_features = jax.random.normal(k_nf, (B, N, DIM_IN), jnp.float32)
    adj = (jax.random.uniform(k_adj, (B, N, N)) > 0.5).astype(jnp.float32)
    adj = jnp.maximum(adj, jnp.eye(N, dtype=jnp.float32)[None])   # self-loops
    masks = jnp.ones((B, N), jnp.float32)
    query_idxs = jax.random.randint(k_q, (B,), 0, N).astype(jnp.int32)

    params = init_params(k_p)
    w_packed = pack_params(params)

    fwd = jax.jit(forward)
    out = fwd(node_features, query_idxs, masks, adj, w_packed)
    out = jax.block_until_ready(out)
    assert out.shape == (B, DIM_OUT)
    assert bool(jnp.all(jnp.isfinite(out)))

    ref = reference_forward(node_features, query_idxs, masks, adj, params)
    np.testing.assert_allclose(np.asarray(out), np.asarray(ref),
                               rtol=2e-3, atol=50.0)

    print("KERNEL_OK")
</pallas_src>

<mosaic_0001>
module attributes {stable_mosaic.version = 11 : i64} {
  func.func @gat_kernel(%arg0: i32, %arg1: memref<2xi32, #tpu.memory_space<smem>>, %arg2: memref<32x40xf32, #tpu.memory_space<vmem>>, %arg3: memref<140x128xf32, #tpu.memory_space<vmem>>, %arg4: memref<2x4xf32, #tpu.memory_space<vmem>>) attributes {dimension_semantics = [#tpu.dimension_semantics<arbitrary>], iteration_bounds = array<i64: 1>, scalar_prefetch = 1 : i64, scratch_operands = 0 : i64, tpu.core_type = #tpu.core_type<tc>, window_params = [{pipeline_mode = #tpu.pipeline_mode<synchronous>, transform_indices = @transform_0, window_bounds = array<i64: 32, 40>}, {pipeline_mode = #tpu.pipeline_mode<synchronous>, transform_indices = @transform_1, window_bounds = array<i64: 140, 128>}, {pipeline_mode = #tpu.pipeline_mode<synchronous>, transform_indices = @transform_2, window_bounds = array<i64: 2, 4>}]} {
    %c0 = arith.constant 0 : index
    %c0_0 = arith.constant 0 : index
    %0 = vector.load %arg2[%c0, %c0_0] : memref<32x40xf32, #tpu.memory_space<vmem>>, vector<32x32xf32>
    %c0_1 = arith.constant 0 : index
    %c32 = arith.constant 32 : index
    %1 = vector.load %arg2[%c0_1, %c32] : memref<32x40xf32, #tpu.memory_space<vmem>>, vector<32x8xf32>
    %c0_2 = arith.constant 0 : index
    %c0_3 = arith.constant 0 : index
    %2 = vector.load %arg3[%c0_2, %c0_3] : memref<140x128xf32, #tpu.memory_space<vmem>>, vector<8x32xf32>
    %c8 = arith.constant 8 : index
    %c0_4 = arith.constant 0 : index
    %3 = vector.load %arg3[%c8, %c0_4] : memref<140x128xf32, #tpu.memory_space<vmem>>, vector<1x32xf32>
    %cst = arith.constant dense<0.000000e+00> : vector<32x32xf32>
    %4 = tpu.matmul %1, %2, %cst {dimension_numbers = #tpu.dot_dimension_numbers<[1], [0], [0], [1], [0, 0, 1, 1], [], []>} : vector<32x8xf32>, vector<8x32xf32>, vector<32x32xf32> -> vector<32x32xf32>
    %5 = vector.broadcast %3 : vector<1x32xf32> to vector<32x32xf32>
    %6 = arith.addf %4, %5 : vector<32x32xf32>
    %cst_5 = arith.constant 0.000000e+00 : f32
    %7 = vector.broadcast %cst_5 : f32 to vector<32x32xf32>
    %8 = arith.cmpf ogt, %6, %7 : vector<32x32xf32>
    %cst_6 = arith.constant 0.000000e+00 : f32
    %9 = vector.broadcast %cst_6 : f32 to vector<32x32xf32>
    %10 = arith.minimumf %6, %9 : vector<32x32xf32>
    %11 = math.exp %10 : vector<32x32xf32>
    %cst_7 = arith.constant 1.000000e+00 : f32
    %12 = vector.broadcast %cst_7 : f32 to vector<32x32xf32>
    %13 = arith.subf %11, %12 : vector<32x32xf32>
    %14 = arith.select %8, %6, %13 : vector<32x32xi1>, vector<32x32xf32>
    %15 = tpu.iota {dimensions = array<i32: 0>} : vector<2x32xi32>
    %16 = tpu.iota {dimensions = array<i32: 1>} : vector<2x32xi32>
    %cst_8 = arith.constant 0.000000e+00 : f32
    %17 = vector.broadcast %cst_8 : f32 to vector<2x32xf32>
    %c0_9 = arith.constant 0 : index
    %18 = memref.load %arg1[%c0_9] : memref<2xi32, #tpu.memory_space<smem>>
    %c0_i32 = arith.constant 0 : i32
    %19 = arith.addi %c0_i32, %18 : i32
    %c0_i32_10 = arith.constant 0 : i32
    %20 = vector.broadcast %c0_i32_10 : i32 to vector<2x32xi32>
    %21 = arith.cmpi eq, %15, %20 : vector<2x32xi32>
    %22 = vector.broadcast %19 : i32 to vector<2x32xi32>
    %23 = arith.cmpi eq, %16, %22 : vector<2x32xi32>
    %24 = arith.andi %21, %23 : vector<2x32xi1>
    %cst_11 = arith.constant 1.000000e+00 : f32
    %25 = vector.broadcast %cst_11 : f32 to vector<2x32xf32>
    %26 = arith.select %24, %25, %17 : vector<2x32xi1>, vector<2x32xf32>
    %c1 = arith.constant 1 : index
    %27 = memref.load %arg1[%c1] : memref<2xi32, #tpu.memory_space<smem>>
    %c16_i32 = arith.constant 16 : i32
    %28 = arith.addi %c16_i32, %27 : i32
    %c1_i32 = arith.constant 1 : i32
    %29 = vector.broadcast %c1_i32 : i32 to vector<2x32xi32>
    %30 = arith.cmpi eq, %15, %29 : vector<2x32xi32>
    %31 = vector.broadcast %28 : i32 to vector<2x32xi32>
    %32 = arith.cmpi eq, %16, %31 : vector<2x32xi32>
    %33 = arith.andi %30, %32 : vector<2x32xi1>
    %cst_12 = arith.constant 1.000000e+00 : f32
    %34 = vector.broadcast %cst_12 : f32 to vector<2x32xf32>
    %35 = arith.select %33, %34, %26 : vector<2x32xi1>, vector<2x32xf32>
    %c9 = arith.constant 9 : index
    %c0_13 = arith.constant 0 : index
    %36 = vector.load %arg3[%c9, %c0_13] : memref<140x128xf32, #tpu.memory_space<vmem>>, vector<32x96xf32>
    %c41 = arith.constant 41 : index
    %c0_14 = arith.constant 0 : index
    %37 = vector.load %arg3[%c41, %c0_14] : memref<140x128xf32, #tpu.memory_space<vmem>>, vector<1x96xf32>
    %cst_15 = arith.constant dense<0.000000e+00> : vector<32x96xf32>
    %38 = tpu.matmul %14, %36, %cst_15 {dimension_numbers = #tpu.dot_dimension_numbers<[1], [0], [0], [1], [0, 0, 1, 1], [], []>} : vector<32x32xf32>, vector<32x96xf32>, vector<32x96xf32> -> vector<32x96xf32>
    %39 = vector.broadcast %37 : vector<1x96xf32> to vector<32x96xf32>
    %40 = arith.addf %38, %39 : vector<32x96xf32>
    %41 = vector.extract_strided_slice %40 {offsets = [0, 0], sizes = [32, 16], strides = [1, 1]} : vector<32x96xf32> to vector<32x16xf32>
    %42 = vector.extract_strided_slice %40 {offsets = [0, 32], sizes = [32, 16], strides = [1, 1]} : vector<32x96xf32> to vector<32x16xf32>
    %43 = vector.extract_strided_slice %40 {offsets = [0, 64], sizes = [32, 16], strides = [1, 1]} : vector<32x96xf32> to vector<32x16xf32>
    %cst_16 = arith.constant dense<0.000000e+00> : vector<32x32xf32>
    %44 = tpu.matmul %41, %42, %cst_16 {dimension_numbers = #tpu.dot_dimension_numbers<[1], [1], [0], [0], [0, 0, 1, 0], [], []>} : vector<32x16xf32>, vector<32x16xf32>, vector<32x32xf32> -> vector<32x32xf32>
    %cst_17 = arith.constant 2.500000e-01 : f32
    %45 = vector.broadcast %cst_17 : f32 to vector<32x32xf32>
    %46 = arith.mulf %44, %45 : vector<32x32xf32>
    %cst_18 = arith.constant 0.000000e+00 : f32
    %47 = vector.broadcast %cst_18 : f32 to vector<32x32xf32>
    %48 = arith.cmpf oeq, %0, %47 : vector<32x32xf32>
    %49 = arith.select %48, %46, %0 : vector<32x32xi1>, vector<32x32xf32>
    %cst_19 = arith.constant dense<0xFF800000> : vector<32xf32>
    %50 = vector.multi_reduction <maximumf>, %49, %cst_19 [1] : vector<32x32xf32> to vector<32xf32>
    %51 = vector.shape_cast %50 : vector<32xf32> to vector<32x1xf32>
    %52 = vector.broadcast %51 : vector<32x1xf32> to vector<32x32xf32>
    %53 = arith.subf %49, %52 : vector<32x32xf32>
    %54 = math.exp %53 : vector<32x32xf32>
    %cst_20 = arith.constant dense<0.000000e+00> : vector<32xf32>
    %55 = vector.multi_reduction <add>, %54, %cst_20 [1] : vector<32x32xf32> to vector<32xf32>
    %56 = vector.shape_cast %55 : vector<32xf32> to vector<32x1xf32>
    %57 = tpu.reciprocal %56 {approx = true} : vector<32x1xf32> -> vector<32x1xf32>
    %58 = arith.mulf %56, %57 : vector<32x1xf32>
    %cst_21 = arith.constant 2.000000e+00 : f32
    %59 = vector.broadcast %cst_21 : f32 to vector<32x1xf32>
    %60 = arith.subf %59, %58 : vector<32x1xf32>
    %61 = arith.mulf %57, %60 : vector<32x1xf32>
    %62 = vector.broadcast %61 : vector<32x1xf32> to vector<32x32xf32>
    %63 = arith.mulf %54, %62 : vector<32x32xf32>
    %cst_22 = arith.constant dense<0.000000e+00> : vector<32x16xf32>
    %64 = tpu.matmul %63, %43, %cst_22 {dimension_numbers = #tpu.dot_dimension_numbers<[1], [0], [0], [1], [0, 0, 1, 1], [], []>} : vector<32x32xf32>, vector<32x16xf32>, vector<32x16xf32> -> vector<32x16xf32>
    %c9_23 = arith.constant 9 : index
    %c96 = arith.constant 96 : index
    %65 = vector.load %arg3[%c9_23, %c96] : memref<140x128xf32, #tpu.memory_space<vmem>>, vector<16x32xf32>
    %cst_24 = arith.constant dense<0.000000e+00> : vector<32x32xf32>
    %66 = tpu.matmul %64, %65, %cst_24 {dimension_numbers = #tpu.dot_dimension_numbers<[1], [0], [0], [1], [0, 0, 1, 1], [], []>} : vector<32x16xf32>, vector<16x32xf32>, vector<32x32xf32> -> vector<32x32xf32>
    %67 = vector.extract_strided_slice %40 {offsets = [0, 16], sizes = [32, 16], strides = [1, 1]} : vector<32x96xf32> to vector<32x16xf32>
    %68 = vector.extract_strided_slice %40 {offsets = [0, 48], sizes = [32, 16], strides = [1, 1]} : vector<32x96xf32> to vector<32x16xf32>
    %69 = vector.extract_strided_slice %40 {offsets = [0, 80], sizes = [32, 16], strides = [1, 1]} : vector<32x96xf32> to vector<32x16xf32>
    %cst_25 = arith.constant dense<0.000000e+00> : vector<32x32xf32>
    %70 = tpu.matmul %67, %68, %cst_25 {dimension_numbers = #tpu.dot_dimension_numbers<[1], [1], [0], [0], [0, 0, 1, 0], [], []>} : vector<32x16xf32>, vector<32x16xf32>, vector<32x32xf32> -> vector<32x32xf32>
    %cst_26 = arith.constant 2.500000e-01 : f32
    %71 = vector.broadcast %cst_26 : f32 to vector<32x32xf32>
    %72 = arith.mulf %70, %71 : vector<32x32xf32>
    %cst_27 = arith.constant 0.000000e+00 : f32
    %73 = vector.broadcast %cst_27 : f32 to vector<32x32xf32>
    %74 = arith.cmpf oeq, %0, %73 : vector<32x32xf32>
    %75 = arith.select %74, %72, %0 : vector<32x32xi1>, vector<32x32xf32>
    %cst_28 = arith.constant dense<0xFF800000> : vector<32xf32>
    %76 = vector.multi_reduction <maximumf>, %75, %cst_28 [1] : vector<32x32xf32> to vector<32xf32>
    %77 = vector.shape_cast %76 : vector<32xf32> to vector<32x1xf32>
    %78 = vector.broadcast %77 : vector<32x1xf32> to vector<32x32xf32>
    %79 = arith.subf %75, %78 : vector<32x32xf32>
    %80 = math.exp %79 : vector<32x32xf32>
    %cst_29 = arith.constant dense<0.000000e+00> : vector<32xf32>
    %81 = vector.multi_reduction <add>, %80, %cst_29 [1] : vector<32x32xf32> to vector<32xf32>
    %82 = vector.shape_cast %81 : vector<32xf32> to vector<32x1xf32>
    %83 = tpu.reciprocal %82 {approx = true} : vector<32x1xf32> -> vector<32x1xf32>
    %84 = arith.mulf %82, %83 : vector<32x1xf32>
    %cst_30 = arith.constant 2.000000e+00 : f32
    %85 = vector.broadcast %cst_30 : f32 to vector<32x1xf32>
    %86 = arith.subf %85, %84 : vector<32x1xf32>
    %87 = arith.mulf %83, %86 : vector<32x1xf32>
    %88 = vector.broadcast %87 : vector<32x1xf32> to vector<32x32xf32>
    %89 = arith.mulf %80, %88 : vector<32x32xf32>
    %cst_31 = arith.constant dense<0.000000e+00> : vector<32x16xf32>
    %90 = tpu.matmul %89, %69, %cst_31 {dimension_numbers = #tpu.dot_dimension_numbers<[1], [0], [0], [1], [0, 0, 1, 1], [], []>} : vector<32x32xf32>, vector<32x16xf32>, vector<32x16xf32> -> vector<32x16xf32>
    %c25 = arith.constant 25 : index
    %c96_32 = arith.constant 96 : index
    %91 = vector.load %arg3[%c25, %c96_32] : memref<140x128xf32, #tpu.memory_space<vmem>>, vector<16x32xf32>
    %cst_33 = arith.constant dense<0.000000e+00> : vector<32x32xf32>
    %92 = tpu.matmul %90, %91, %cst_33 {dimension_numbers = #tpu.dot_dimension_numbers<[1], [0], [0], [1], [0, 0, 1, 1], [], []>} : vector<32x16xf32>, vector<16x32xf32>, vector<32x32xf32> -> vector<32x32xf32>
    %93 = arith.addf %66, %92 : vector<32x32xf32>
    %c41_34 = arith.constant 41 : index
    %c96_35 = arith.constant 96 : index
    %94 = vector.load %arg3[%c41_34, %c96_35] : memref<140x128xf32, #tpu.memory_space<vmem>>, vector<1x32xf32>
    %95 = vector.broadcast %94 : vector<1x32xf32> to vector<32x32xf32>
    %96 = arith.addf %93, %95 : vector<32x32xf32>
    %cst_36 = arith.constant 0.000000e+00 : f32
    %97 = vector.broadcast %cst_36 : f32 to vector<32x32xf32>
    %98 = arith.cmpf ogt, %96, %97 : vector<32x32xf32>
    %cst_37 = arith.constant 0.000000e+00 : f32
    %99 = vector.broadcast %cst_37 : f32 to vector<32x32xf32>
    %100 = arith.minimumf %96, %99 : vector<32x32xf32>
    %101 = math.exp %100 : vector<32x32xf32>
    %cst_38 = arith.constant 1.000000e+00 : f32
    %102 = vector.broadcast %cst_38 : f32 to vector<32x32xf32>
    %103 = arith.subf %101, %102 : vector<32x32xf32>
    %104 = arith.select %98, %96, %103 : vector<32x32xi1>, vector<32x32xf32>
    %cst_39 = arith.constant dense<0.000000e+00> : vector<2x32xf32>
    %105 = tpu.matmul %35, %104, %cst_39 {dimension_numbers = #tpu.dot_dimension_numbers<[1], [0], [0], [1], [0, 0, 1, 1], [], []>} : vector<2x32xf32>, vector<32x32xf32>, vector<2x32xf32> -> vector<2x32xf32>
    %c75 = arith.constant 75 : index
    %c0_40 = arith.constant 0 : index
    %106 = vector.load %arg3[%c75, %c0_40] : memref<140x128xf32, #tpu.memory_space<vmem>>, vector<32x32xf32>
    %cst_41 = arith.constant dense<0.000000e+00> : vector<2x32xf32>
    %107 = tpu.matmul %105, %106, %cst_41 {dimension_numbers = #tpu.dot_dimension_numbers<[1], [0], [0], [1], [0, 0, 1, 1], [], []>} : vector<2x32xf32>, vector<32x32xf32>, vector<2x32xf32> -> vector<2x32xf32>
    %c42 = arith.constant 42 : index
    %c0_42 = arith.constant 0 : index
    %108 = vector.load %arg3[%c42, %c0_42] : memref<140x128xf32, #tpu.memory_space<vmem>>, vector<32x96xf32>
    %c74 = arith.constant 74 : index
    %c0_43 = arith.constant 0 : index
    %109 = vector.load %arg3[%c74, %c0_43] : memref<140x128xf32, #tpu.memory_space<vmem>>, vector<1x96xf32>
    %cst_44 = arith.constant dense<0.000000e+00> : vector<32x96xf32>
    %110 = tpu.matmul %104, %108, %cst_44 {dimension_numbers = #tpu.dot_dimension_numbers<[1], [0], [0], [1], [0, 0, 1, 1], [], []>} : vector<32x32xf32>, vector<32x96xf32>, vector<32x96xf32> -> vector<32x96xf32>
    %111 = vector.broadcast %109 : vector<1x96xf32> to vector<32x96xf32>
    %112 = arith.addf %110, %111 : vector<32x96xf32>
    %113 = vector.extract_strided_slice %112 {offsets = [0, 0], sizes = [32, 16], strides = [1, 1]} : vector<32x96xf32> to vector<32x16xf32>
    %114 = vector.extract_strided_slice %112 {offsets = [0, 32], sizes = [32, 16], strides = [1, 1]} : vector<32x96xf32> to vector<32x16xf32>
    %115 = vector.extract_strided_slice %112 {offsets = [0, 64], sizes = [32, 16], strides = [1, 1]} : vector<32x96xf32> to vector<32x16xf32>
    %cst_45 = arith.constant dense<0.000000e+00> : vector<32x32xf32>
    %116 = tpu.matmul %113, %114, %cst_45 {dimension_numbers = #tpu.dot_dimension_numbers<[1], [1], [0], [0], [0, 0, 1, 0], [], []>} : vector<32x16xf32>, vector<32x16xf32>, vector<32x32xf32> -> vector<32x32xf32>
    %cst_46 = arith.constant 2.500000e-01 : f32
    %117 = vector.broadcast %cst_46 : f32 to vector<32x32xf32>
    %118 = arith.mulf %116, %117 : vector<32x32xf32>
    %cst_47 = arith.constant 0.000000e+00 : f32
    %119 = vector.broadcast %cst_47 : f32 to vector<32x32xf32>
    %120 = arith.cmpf oeq, %0, %119 : vector<32x32xf32>
    %121 = arith.select %120, %118, %0 : vector<32x32xi1>, vector<32x32xf32>
    %cst_48 = arith.constant dense<0xFF800000> : vector<32xf32>
    %122 = vector.multi_reduction <maximumf>, %121, %cst_48 [1] : vector<32x32xf32> to vector<32xf32>
    %123 = vector.shape_cast %122 : vector<32xf32> to vector<32x1xf32>
    %124 = vector.broadcast %123 : vector<32x1xf32> to vector<32x32xf32>
    %125 = arith.subf %121, %124 : vector<32x32xf32>
    %126 = math.exp %125 : vector<32x32xf32>
    %cst_49 = arith.constant dense<0.000000e+00> : vector<32xf32>
    %127 = vector.multi_reduction <add>, %126, %cst_49 [1] : vector<32x32xf32> to vector<32xf32>
    %128 = vector.shape_cast %127 : vector<32xf32> to vector<32x1xf32>
    %129 = tpu.reciprocal %128 {approx = true} : vector<32x1xf32> -> vector<32x1xf32>
    %130 = arith.mulf %128, %129 : vector<32x1xf32>
    %cst_50 = arith.constant 2.000000e+00 : f32
    %131 = vector.broadcast %cst_50 : f32 to vector<32x1xf32>
    %132 = arith.subf %131, %130 : vector<32x1xf32>
    %133 = arith.mulf %129, %132 : vector<32x1xf32>
    %134 = vector.broadcast %133 : vector<32x1xf32> to vector<32x32xf32>
    %135 = arith.mulf %126, %134 : vector<32x32xf32>
    %cst_51 = arith.constant dense<0.000000e+00> : vector<32x16xf32>
    %136 = tpu.matmul %135, %115, %cst_51 {dimension_numbers = #tpu.dot_dimension_numbers<[1], [0], [0], [1], [0, 0, 1, 1], [], []>} : vector<32x32xf32>, vector<32x16xf32>, vector<32x16xf32> -> vector<32x16xf32>
    %c42_52 = arith.constant 42 : index
    %c96_53 = arith.constant 96 : index
    %137 = vector.load %arg3[%c42_52, %c96_53] : memref<140x128xf32, #tpu.memory_space<vmem>>, vector<16x32xf32>
    %cst_54 = arith.constant dense<0.000000e+00> : vector<32x32xf32>
    %138 = tpu.matmul %136, %137, %cst_54 {dimension_numbers = #tpu.dot_dimension_numbers<[1], [0], [0], [1], [0, 0, 1, 1], [], []>} : vector<32x16xf32>, vector<16x32xf32>, vector<32x32xf32> -> vector<32x32xf32>
    %139 = vector.extract_strided_slice %112 {offsets = [0, 16], sizes = [32, 16], strides = [1, 1]} : vector<32x96xf32> to vector<32x16xf32>
    %140 = vector.extract_strided_slice %112 {offsets = [0, 48], sizes = [32, 16], strides = [1, 1]} : vector<32x96xf32> to vector<32x16xf32>
    %141 = vector.extract_strided_slice %112 {offsets = [0, 80], sizes = [32, 16], strides = [1, 1]} : vector<32x96xf32> to vector<32x16xf32>
    %cst_55 = arith.constant dense<0.000000e+00> : vector<32x32xf32>
    %142 = tpu.matmul %139, %140, %cst_55 {dimension_numbers = #tpu.dot_dimension_numbers<[1], [1], [0], [0], [0, 0, 1, 0], [], []>} : vector<32x16xf32>, vector<32x16xf32>, vector<32x32xf32> -> vector<32x32xf32>
    %cst_56 = arith.constant 2.500000e-01 : f32
    %143 = vector.broadcast %cst_56 : f32 to vector<32x32xf32>
    %144 = arith.mulf %142, %143 : vector<32x32xf32>
    %cst_57 = arith.constant 0.000000e+00 : f32
    %145 = vector.broadcast %cst_57 : f32 to vector<32x32xf32>
    %146 = arith.cmpf oeq, %0, %145 : vector<32x32xf32>
    %147 = arith.select %146, %144, %0 : vector<32x32xi1>, vector<32x32xf32>
    %cst_58 = arith.constant dense<0xFF800000> : vector<32xf32>
    %148 = vector.multi_reduction <maximumf>, %147, %cst_58 [1] : vector<32x32xf32> to vector<32xf32>
    %149 = vector.shape_cast %148 : vector<32xf32> to vector<32x1xf32>
    %150 = vector.broadcast %149 : vector<32x1xf32> to vector<32x32xf32>
    %151 = arith.subf %147, %150 : vector<32x32xf32>
    %152 = math.exp %151 : vector<32x32xf32>
    %cst_59 = arith.constant dense<0.000000e+00> : vector<32xf32>
    %153 = vector.multi_reduction <add>, %152, %cst_59 [1] : vector<32x32xf32> to vector<32xf32>
    %154 = vector.shape_cast %153 : vector<32xf32> to vector<32x1xf32>
    %155 = tpu.reciprocal %154 {approx = true} : vector<32x1xf32> -> vector<32x1xf32>
    %156 = arith.mulf %154, %155 : vector<32x1xf32>
    %cst_60 = arith.constant 2.000000e+00 : f32
    %157 = vector.broadcast %cst_60 : f32 to vector<32x1xf32>
    %158 = arith.subf %157, %156 : vector<32x1xf32>
    %159 = arith.mulf %155, %158 : vector<32x1xf32>
    %160 = vector.broadcast %159 : vector<32x1xf32> to vector<32x32xf32>
    %161 = arith.mulf %152, %160 : vector<32x32xf32>
    %cst_61 = arith.constant dense<0.000000e+00> : vector<32x16xf32>
    %162 = tpu.matmul %161, %141, %cst_61 {dimension_numbers = #tpu.dot_dimension_numbers<[1], [0], [0], [1], [0, 0, 1, 1], [], []>} : vector<32x32xf32>, vector<32x16xf32>, vector<32x16xf32> -> vector<32x16xf32>
    %c58 = arith.constant 58 : index
    %c96_62 = arith.constant 96 : index
    %163 = vector.load %arg3[%c58, %c96_62] : memref<140x128xf32, #tpu.memory_space<vmem>>, vector<16x32xf32>
    %cst_63 = arith.constant dense<0.000000e+00> : vector<32x32xf32>
    %164 = tpu.matmul %162, %163, %cst_63 {dimension_numbers = #tpu.dot_dimension_numbers<[1], [0], [0], [1], [0, 0, 1, 1], [], []>} : vector<32x16xf32>, vector<16x32xf32>, vector<32x32xf32> -> vector<32x32xf32>
    %165 = arith.addf %138, %164 : vector<32x32xf32>
    %c74_64 = arith.constant 74 : index
    %c96_65 = arith.constant 96 : index
    %166 = vector.load %arg3[%c74_64, %c96_65] : memref<140x128xf32, #tpu.memory_space<vmem>>, vector<1x32xf32>
    %167 = vector.broadcast %166 : vector<1x32xf32> to vector<32x32xf32>
    %168 = arith.addf %165, %167 : vector<32x32xf32>
    %cst_66 = arith.constant 0.000000e+00 : f32
    %169 = vector.broadcast %cst_66 : f32 to vector<32x32xf32>
    %170 = arith.cmpf ogt, %168, %169 : vector<32x32xf32>
    %cst_67 = arith.constant 0.000000e+00 : f32
    %171 = vector.broadcast %cst_67 : f32 to vector<32x32xf32>
    %172 = arith.minimumf %168, %171 : vector<32x32xf32>
    %173 = math.exp %172 : vector<32x32xf32>
    %cst_68 = arith.constant 1.000000e+00 : f32
    %174 = vector.broadcast %cst_68 : f32 to vector<32x32xf32>
    %175 = arith.subf %173, %174 : vector<32x32xf32>
    %176 = arith.select %170, %168, %175 : vector<32x32xi1>, vector<32x32xf32>
    %cst_69 = arith.constant dense<0.000000e+00> : vector<2x32xf32>
    %177 = tpu.matmul %35, %176, %cst_69 {dimension_numbers = #tpu.dot_dimension_numbers<[1], [0], [0], [1], [0, 0, 1, 1], [], []>} : vector<2x32xf32>, vector<32x32xf32>, vector<2x32xf32> -> vector<2x32xf32>
    %c107 = arith.constant 107 : index
    %c0_70 = arith.constant 0 : index
    %178 = vector.load %arg3[%c107, %c0_70] : memref<140x128xf32, #tpu.memory_space<vmem>>, vector<32x32xf32>
    %cst_71 = arith.constant dense<0.000000e+00> : vector<2x32xf32>
    %179 = tpu.matmul %177, %178, %cst_71 {dimension_numbers = #tpu.dot_dimension_numbers<[1], [0], [0], [1], [0, 0, 1, 1], [], []>} : vector<2x32xf32>, vector<32x32xf32>, vector<2x32xf32> -> vector<2x32xf32>
    %180 = arith.addf %107, %179 : vector<2x32xf32>
    %c139 = arith.constant 139 : index
    %c0_72 = arith.constant 0 : index
    %181 = vector.load %arg3[%c139, %c0_72] : memref<140x128xf32, #tpu.memory_space<vmem>>, vector<1x32xf32>
    %182 = vector.broadcast %181 : vector<1x32xf32> to vector<2x32xf32>
    %183 = arith.addf %180, %182 : vector<2x32xf32>
    %cst_73 = arith.constant 0.000000e+00 : f32
    %184 = vector.broadcast %cst_73 : f32 to vector<2x32xf32>
    %185 = arith.cmpf ogt, %183, %184 : vector<2x32xf32>
    %cst_74 = arith.constant 0.000000e+00 : f32
    %186 = vector.broadcast %cst_74 : f32 to vector<2x32xf32>
    %187 = arith.minimumf %183, %186 : vector<2x32xf32>
    %188 = math.exp %187 : vector<2x32xf32>
    %cst_75 = arith.constant 1.000000e+00 : f32
    %189 = vector.broadcast %cst_75 : f32 to vector<2x32xf32>
    %190 = arith.subf %188, %189 : vector<2x32xf32>
    %191 = arith.select %185, %183, %190 : vector<2x32xi1>, vector<2x32xf32>
    %c75_76 = arith.constant 75 : index
    %c32_77 = arith.constant 32 : index
    %192 = vector.load %arg3[%c75_76, %c32_77] : memref<140x128xf32, #tpu.memory_space<vmem>>, vector<32x4xf32>
    %c107_78 = arith.constant 107 : index
    %c32_79 = arith.constant 32 : index
    %193 = vector.load %arg3[%c107_78, %c32_79] : memref<140x128xf32, #tpu.memory_space<vmem>>, vector<1x4xf32>
    %cst_80 = arith.constant dense<0.000000e+00> : vector<2x4xf32>
    %194 = tpu.matmul %191, %192, %cst_80 {dimension_numbers = #tpu.dot_dimension_numbers<[1], [0], [0], [1], [0, 0, 1, 1], [], []>} : vector<2x32xf32>, vector<32x4xf32>, vector<2x4xf32> -> vector<2x4xf32>
    %195 = vector.broadcast %193 : vector<1x4xf32> to vector<2x4xf32>
    %196 = arith.addf %194, %195 : vector<2x4xf32>
    %cst_81 = arith.constant 0.000000e+00 : f32
    %197 = vector.broadcast %cst_81 : f32 to vector<2x4xf32>
    %198 = arith.cmpf ogt, %196, %197 : vector<2x4xf32>
    %cst_82 = arith.constant 0.000000e+00 : f32
    %199 = vector.broadcast %cst_82 : f32 to vector<2x4xf32>
    %200 = arith.minimumf %196, %199 : vector<2x4xf32>
    %201 = math.exp %200 : vector<2x4xf32>
    %cst_83 = arith.constant 1.000000e+00 : f32
    %202 = vector.broadcast %cst_83 : f32 to vector<2x4xf32>
    %203 = arith.subf %201, %202 : vector<2x4xf32>
    %204 = arith.select %198, %196, %203 : vector<2x4xi1>, vector<2x4xf32>
    %cst_84 = arith.constant 1999853.38 : f32
    %205 = vector.broadcast %cst_84 : f32 to vector<2x4xf32>
    %206 = arith.mulf %204, %205 : vector<2x4xf32>
    %c0_85 = arith.constant 0 : index
    %c0_86 = arith.constant 0 : index
    %207 = vector.load %arg4[%c0_85, %c0_86] : memref<2x4xf32, #tpu.memory_space<vmem>>, vector<2x4xf32>
    tpu.vector_store %arg4[%c0_85, %c0_86], %206 {strides = array<i32>} : memref<2x4xf32, #tpu.memory_space<vmem>>, vector<2x4xf32>,
    return
  }
  func.func @transform_0(%arg0: i32, %arg1: memref<2xi32, #tpu.memory_space<smem>>) -> (i32, i32) {
    %c0_i32 = arith.constant 0 : i32
    %c0_i32_0 = arith.constant 0 : i32
    %c0_i32_1 = arith.constant 0 : i32
    return %c0_i32, %c0_i32_0 : i32, i32
  }
  func.func @transform_1(%arg0: i32, %arg1: memref<2xi32, #tpu.memory_space<smem>>) -> (i32, i32) {
    %c0_i32 = arith.constant 0 : i32
    %c0_i32_0 = arith.constant 0 : i32
    %c0_i32_1 = arith.constant 0 : i32
    return %c0_i32, %c0_i32_0 : i32, i32
  }
  func.func @transform_2(%arg0: i32, %arg1: memref<2xi32, #tpu.memory_space<smem>>) -> (i32, i32) {
    %c0_i32 = arith.constant 0 : i32
    %c0_i32_0 = arith.constant 0 : i32
    %c0_i32_1 = arith.constant 0 : i32
    return %c0_i32, %c0_i32_0 : i32, i32
  }
}

</mosaic_0001>

<bundles_post_ra>
// kernel: forward.1
= control target key start
LH: loop header
LB: loop body
LE: loop exit
PB: predicated region body
PF: predicated region fallthrough
CT: control target
= control target key end

     0   :  { %s3908_s0 = inlined_call_operand.vmem [shape: s32[2], index: 0, kind: input, shape index: {}]   ;;  %s3909_s1 = inlined_call_operand.vmem [shape: f32[32,40], index: 1, kind: input, shape index: {}]   ;;  %s3910_s2 = inlined_call_operand.vmem [shape: f32[140,128], index: 2, kind: input, shape index: {}]   ;;  %s3911_s3 = inlined_call_operand.hbm [shape: f32[2,4], index: 3, kind: output, shape index: {}]  }
   0x1   :  { %s8_s14 = sshll.u32 %s3908_s0, 4  ;;  %s9_s14 = int_to_ptr.vmem [resolvable:$true] %s8_s14 }
   0x2   :  { %s3309_s15 = scalar_lea.vmem %s9_s14, 16  ;;  %p3314_p1 = scmp.lt.s32.totalorder %s9_s14, %s9_s14 }
   0x3   :  { %p3310_p0 = scmp.ne.s32.totalorder %s9_s14, %s3309_s15  ;;  %p3315_p2 = scmp.lt.s32.totalorder %s3309_s15, %s3309_s15 }
   0x5   :  { %p3316_p3 = por %p3315_p2, %p3314_p1 }
   0x7   :  { %p3317_p4 = pnand %p3316_p3, %p3310_p0 }
   0x9   :  { %3320 = shalt.err (!%p3317_p4)  }
   0xa   :  { %s3347_s16 = smov [#allocation3]  }
   0xb   :  { %11 = dma.vmem_to_smem %s9_s14, 16, %s3347_s16, [#allocation2] }
   0xc   :  { %3343 = dma.done.wait [#allocation2], 16 }
   0xd   :  { %3344 = vsyncadd [#allocation2], 4294967280 }
   0xe   :  { %13 = sfence }
   0xf   :  { %v3384_v0 = vld [vmem:[%s3909_s1] sm:$0xff]  ;;  %v3389_v1 = vld [vmem:[%s3909_s1 + $0x10] sm:$0xff]  ;;  %s3348_s20 = smov 96   ;;  %v3401_v3 = vld [vmem:[%s3909_s1 + $0x8] sm:$0xff] }
  0x10   :  { %33 = vrot.lane.b32.xlu0 %v3384_v0, %s3348_s20  ;;  %37 = vrot.lane.b32.xlu1 %v3389_v1, %s3348_s20  ;;  %v23_v2 = vld [vmem:[%s3910_s2] sm:$0xff]  ;;  %v3406_v4 = vld [vmem:[%s3909_s1 + $0x18] sm:$0xff] }
  0x11   :  { %2699 = vmatprep.subr.mxu0 %v23_v2 }
  0x12   :  { %14 = vsyncpa [#allocation5], 0  ;;  %2700 = vmatpush3.msra.mxu0 %v23_v2  ;;  %vm41_vm0 = vcmask 64512   ;;  %v3415_v9 = vld [vmem:[%s3910_s2 + $0x9] sm:$0xff]  ;;  %v3420_v10 = vld [vmem:[%s3910_s2 + $0x11] sm:$0xff]  ;;  %vm185_vm1 = vcmask 261120  }
  0x13   :  { %v3425_v11 = vld [vmem:[%s3910_s2 + $0x19] sm:$0xff]  ;;  %v2942_v12 = vpack.c.bf16 %v3420_v10, %v3415_v9  ;;  %v3432_v13 = vld [vmem:[%s3910_s2 + $0x21] sm:$0xff]  ;;  %v3446_v44 = vld [vmem:[%s3910_s2 + $0x29] ss:$0 sm:$0xff]  ;;  %vm295_vm6 = vcmask 130048   ;;  %vm402_vm8 = vcmp.eq.f32.partialorder %v3401_v3, 0.0 }
  0x14   :  { %35 = vrot.lane.b32.xlu0 %v3401_v3, %s3348_s20  ;;  %39 = vrot.lane.b32.xlu1 %v3406_v4, %s3348_s20  ;;  %v2946_v14 = vpack.c.bf16 %v3432_v13, %v3425_v11  ;;  %v2464_v15 = vld [vmem:[%s3910_s2 + $0x8] ss:$0 sm:$0xff]  ;;  %vm3476_vm7 = vmpackc.low %vm295_vm6, %vm295_vm6  ;;  %vm401_vm9 = vcmp.eq.f32.partialorder %v3384_v0, 0.0  ;;  %vm403_vm10 = vcmp.eq.f32.partialorder %v3389_v1, 0.0  ;;  %vm404_vm11 = vcmp.eq.f32.partialorder %v3406_v4, 0.0  ;;  %s3349_s12 = smov 64  }
  0x15   :  { %2943 = vmatprep.subr.bf16.mxu1 %v2942_v12  ;;  %s3350_s13 = smov 80   ;;  %s3351_s14 = smov 112   ;;  %vm3355_vm12 = vmmov 0  }
  0x16   :  { %2945 = vmatpush3.bf16.msra.mxu1 %v2942_v12  ;;  %s3352_s15 = smov 48   ;;  %s3353_s16 = smov 32  }
  0x17   :  { %2947 = vmatprep.subr.bf16.mxu1 %v2946_v14  ;;  %s163_s17 = sld [smem:[#allocation3]]  ;;  %s2473_s18 = sld [smem:[#allocation3 + $0x1]] }
  0x1a   :  { %2949 = vmatpush3.bf16.msra.mxu1 %v2946_v14 }
  0x1d   :  { %s170_s19 = sadd.s32 16, %s2473_s18 }
  0x82   :  { %v34_v5 = vpop.permute.xlu0 %33  ;;  %v38_v6 = vpop.permute.xlu1 %37 }
  0x83   :  { %2701 = vmatprep.mubr.msk.f32.mxu0 %vm41_vm0, %v34_v5 }
  0x86   :  { %v36_v7 = vpop.permute.xlu0 %35  ;;  %v40_v8 = vpop.permute.xlu1 %39 }
  0x87   :  { %2702 = vmatmul.mubr.msk.f32.vlgmr.msra.gmra.mrb[0].mxu0 %vm41_vm0, %v36_v7 }
  0x88   :  { %2704 = vmatprep.mubr.msk.f32.mxu0 %vm41_vm0, %v38_v6 }
  0x8b   :  { %2705 = vmatmul.mubr.msk.f32.gmra.mrb[2].mxu0 %vm41_vm0, %v40_v8 }
 0x15a   :  { %v2703_v16 = vpop.f32.mrb[0].mxu0 }
 0x15b   :  { %v122_v17 = vadd.f32 %v2703_v16, %v2464_v15  ;;  %v116_v18 = vpop.f32.mrb[1].mxu0 }
 0x15c   :  { %v117_v19 = vadd.f32 %v2464_v15, %v116_v18 }
 0x15d   :  { %v140_v20 = vmin.f32 %v122_v17, 0.0  ;;  %vm136_vm3 = vcmp.gt.f32.partialorder %v122_v17, 0.0 }
 0x15e   :  { %v139_v21 = vmin.f32 %v117_v19, 0.0  ;;  %v2706_v22 = vpop.f32.mrb[2].mxu0  ;;  %vm135_vm2 = vcmp.gt.f32.partialorder %v117_v19, 0.0 }
 0x15f   :  { %v145_v23 = vmul.f32 1.442695, %v140_v20  ;;  %v132_v24 = vadd.f32 %v2706_v22, %v2464_v15  ;;  %v126_v25 = vpop.f32.mrb[3].mxu0 }
 0x160   :  { %v143_v26 = vmul.f32 1.442695, %v139_v21  ;;  %v127_v27 = vadd.f32 %v2464_v15, %v126_v25 }
 0x161   :  { %3213 = vpow2.f32 %v145_v23  ;;  %v142_v28 = vmin.f32 %v132_v24, 0.0  ;;  %vm138_vm5 = vcmp.gt.f32.partialorder %v132_v24, 0.0 }
 0x162   :  { %3215 = vpow2.f32 %v143_v26  ;;  %v141_v29 = vmin.f32 %v127_v27, 0.0  ;;  %vm137_vm4 = vcmp.gt.f32.partialorder %v127_v27, 0.0 }
 0x163   :  { %v149_v30 = vmul.f32 1.442695, %v142_v28 }
 0x164   :  { %v147_v31 = vmul.f32 1.442695, %v141_v29 }
 0x165   :  { %3217 = vpow2.f32 %v149_v30 }
 0x166   :  { %3219 = vpow2.f32 %v147_v31 }
 0x16b   :  { %v3214_v32 = vpop.eup %3213 }
 0x16c   :  { %v3216_v33 = vpop.eup %3215  ;;  %v2470_v34 = vadd.f32 -1.0, %v3214_v32 }
 0x16d   :  { %v2469_v35 = vadd.f32 -1.0, %v3216_v33 }
 0x16e   :  { %v156_v39 = vsel %vm136_vm3, %v122_v17, %v2470_v34 }
 0x16f   :  { %v3218_v36 = vpop.eup %3217  ;;  %v155_v37 = vsel %vm135_vm2, %v117_v19, %v2469_v35 }
 0x170   :  { %v3220_v38 = vpop.eup %3219  ;;  %2715 = vmatprep.mubr.msk.f32.mxu1 %vm185_vm1, %v155_v37  ;;  %v2472_v40 = vadd.f32 -1.0, %v3218_v36 }
 0x171   :  { %2716 = vmatmul.mubr.msk.f32.vlgmr.msra.gmra.mrb[0].mxu1 %vm185_vm1, %v156_v39  ;;  %v2471_v41 = vadd.f32 -1.0, %v3220_v38 }
 0x172   :  { %v158_v43 = vsel %vm138_vm5, %v132_v24, %v2472_v40 }
 0x173   :  { %v157_v42 = vsel %vm137_vm4, %v127_v27, %v2471_v41 }
 0x174   :  { %2718 = vmatprep.mubr.msk.f32.mxu1 %vm185_vm1, %v157_v42 }
 0x175   :  { %2719 = vmatmul.mubr.msk.f32.gmra.mrb[2].mxu1 %vm185_vm1, %v158_v43 }
 0x244   :  { %v2717_v45 = vpop.f32.mrb[0].mxu1 }
 0x245   :  { %v3449_v46 = vadd.f32 %v2717_v45, %v3446_v44  ;;  %v264_v47 = vpop.f32.mrb[1].mxu1 }
 0x246   :  { %v3452_v48 = vadd.f32 %v3446_v44, %v264_v47 }
 0x248   :  { %v2720_v49 = vpop.f32.mrb[2].mxu1  ;;  %2729 = vmatprep.mubr.msk.f32.mxu0 %vm295_vm6, %v3452_v48  ;;  %v3458_v50 = vpack.i.bf16 %v3449_v46, %v3452_v48 }
 0x249   :  { %v3461_v51 = vadd.f32 %v2720_v49, %v3446_v44  ;;  %v274_v52 = vpop.f32.mrb[3].mxu1 }
 0x24a   :  { %v3464_v53 = vadd.f32 %v3446_v44, %v274_v52  ;;  %3104 = vrot.lane.b32.xlu0 %v3458_v50, %s3348_s20 }
 0x24c   :  { %v3470_v54 = vpack.i.bf16 %v3461_v51, %v3464_v53 }
 0x24e   :  { %3109 = vrot.lane.b32.xlu1 %v3470_v54, %s3348_s20 }
 0x2bc   :  { %v3105_v55 = vpop.permute.xlu0 %3104 }
 0x2bd   :  { %v3107_v56 = vunpack.i.h.bf16 %v3105_v55  ;;  %v3106_v57 = vunpack.i.l.bf16 %v3105_v55 }
 0x2bf   :  { %v2950_v59 = vpack.c.bf16 %v3107_v56, %v3106_v57 }
 0x2c0   :  { %v3110_v60 = vpop.permute.xlu1 %3109 }
 0x2c1   :  { %v3112_v61 = vunpack.i.h.bf16 %v3110_v60  ;;  %v3111_v62 = vunpack.i.l.bf16 %v3110_v60  ;;  %2952 = vmatprep.subr.msk.bf16.mxu0 %vm3476_vm7, %v2950_v59 }
 0x2c2   :  { %2955 = vmatpush3.bf16.xpose.msk.msra.mxu0 %vm3476_vm7, %v2950_v59 }
 0x2c3   :  { %v2956_v63 = vpack.c.bf16 %v3112_v61, %v3111_v62 }
 0x2c5   :  { %2958 = vmatprep.subr.msk.bf16.mxu0 %vm3476_vm7, %v2956_v63 }
 0x2ca   :  { %2961 = vmatpush3.bf16.xpose.msk.msra.mxu0 %vm3476_vm7, %v2956_v63 }
 0x2d1   :  { %2730 = vmatmul.mubr.msk.f32.vlgmr.msra.gmra.mrb[4].mxu0 %vm295_vm6, %v3449_v46 }
 0x2d2   :  { %2732 = vmatprep.mubr.msk.f32.mxu0 %vm295_vm6, %v3464_v53 }
 0x2d5   :  { %2733 = vmatmul.mubr.msk.f32.gmra.mrb[6].mxu0 %vm295_vm6, %v3461_v51 }
 0x3a4   :  { %v2731_v2 = vpop.f32.mrb[4].mxu0 }
 0x3a5   :  { %v398_v5 = vmul.f32 0.25, %v2731_v2  ;;  %v378_v6 = vpop.f32.mrb[5].mxu0 }
 0x3a6   :  { %v397_v7 = vmul.f32 0.25, %v378_v6 }
 0x3a7   :  { %v406_v8 = vsel %vm402_vm8, %v398_v5, %v3401_v3 }
 0x3a8   :  { %v2734_v12 = vpop.f32.mrb[6].mxu0  ;;  %v412_v14 = vsel %vm185_vm1, %v406_v8, -inf  ;;  %v405_v15 = vsel %vm401_vm9, %v397_v7, %v3384_v0 }
 0x3a9   :  { %413 = vmax.xlane.f32.xlu1 %v412_v14  ;;  %v388_v16 = vpop.f32.mrb[7].mxu0  ;;  %v409_v17 = vsel %vm185_vm1, %v405_v15, -inf  ;;  %v400_v18 = vmul.f32 0.25, %v2734_v12 }
 0x3aa   :  { %v399_v19 = vmul.f32 0.25, %v388_v16  ;;  %410 = vmax.xlane.f32.xlu0 %v409_v17 }
 0x3ab   :  { %v408_v22 = vsel %vm404_vm11, %v400_v18, %v3406_v4 }
 0x3ac   :  { %v407_v20 = vsel %vm403_vm10, %v399_v19, %v3389_v1  ;;  %v418_v23 = vsel %vm185_vm1, %v408_v22, -inf }
 0x3ad   :  { %v415_v21 = vsel %vm185_vm1, %v407_v20, -inf }
 0x3ae   :  { %416 = vmax.xlane.f32.xlu0 %v415_v21 }
 0x3b2   :  { %419 = vmax.xlane.f32.xlu0 %v418_v23 }
 0x3ba   :  { %3114 = vrot.lane.b32.xlu1 %v3458_v50, %s3349_s12 }
 0x436   :  { %v414_v24 = vpop.xlane.xlu1 %413 }
 0x437   :  { %v422_v25 = vsub.f32 %v406_v8, %v414_v24  ;;  %v411_v26 = vpop.xlane.xlu0 %410 }
 0x438   :  { %v421_v27 = vsub.f32 %v405_v15, %v411_v26 }
 0x439   :  { %v427_v28 = vmul.f32 1.442695, %v422_v25 }
 0x43a   :  { %v425_v29 = vmul.f32 1.442695, %v421_v27  ;;  %v3115_v30 = vpop.permute.xlu1 %3114 }
 0x43b   :  { %3221 = vpow2.f32 %v427_v28  ;;  %v3117_v31 = vunpack.i.h.bf16 %v3115_v30  ;;  %v3116_v32 = vunpack.i.l.bf16 %v3115_v30  ;;  %v417_v33 = vpop.xlane.xlu0 %416 }
 0x43c   :  { %3223 = vpow2.f32 %v425_v29  ;;  %v423_v45 = vsub.f32 %v407_v20, %v417_v33 }
 0x43d   :  { %v2962_v34 = vpack.c.bf16 %v3117_v31, %v3116_v32 }
 0x43e   :  { %v429_v47 = vmul.f32 1.442695, %v423_v45 }
 0x43f   :  { %2963 = vmatprep.subr.bf16.mxu1 %v2962_v34  ;;  %v420_v35 = vpop.xlane.xlu0 %419 }
 0x440   :  { %v424_v36 = vsub.f32 %v408_v22, %v420_v35  ;;  %2965 = vmatpush3.bf16.msra.mxu1 %v2962_v34 }
 0x442   :  { %v431_v37 = vmul.f32 1.442695, %v424_v36 }
 0x444   :  { %3225 = vpow2.f32 %v431_v37 }
 0x445   :  { %v3222_v38 = vpop.eup %3221  ;;  %3227 = vpow2.f32 %v429_v47 }
 0x446   :  { %v3224_v39 = vpop.eup %3223  ;;  %v436_v40 = vsel %vm185_vm1, %v3222_v38, 0.0 }
 0x447   :  { %437 = vadd.xlane.f32.xlu0 %v436_v40  ;;  %v433_v41 = vsel %vm185_vm1, %v3224_v39, 0.0 }
 0x448   :  { %434 = vadd.xlane.f32.xlu1 %v433_v41 }
 0x44e   :  { %v3518_v42 = vpop.eup %3225 }
 0x44f   :  { %v442_v43 = vsel %vm185_vm1, %v3518_v42, 0.0  ;;  %v3228_v49 = vpop.eup %3227 }
 0x450   :  { %443 = vadd.xlane.f32.xlu0 %v442_v43  ;;  %v439_v52 = vsel %vm185_vm1, %v3228_v49, 0.0 }
 0x459   :  { %3124 = vrot.lane.b32.xlu1 %v3458_v50, %s3350_s13 }
 0x466   :  { %3119 = vrot.lane.b32.xlu0 %v3470_v54, %s3349_s12 }
 0x46a   :  { %576 = vrot.lane.b32.xlu0 %v3452_v48, %s3351_s14 }
 0x46e   :  { %580 = vrot.lane.b32.xlu0 %v3464_v53, %s3351_s14 }
 0x47d   :  { %440 = vadd.xlane.f32.xlu1 %v439_v52 }
 0x48e   :  { %3129 = vrot.lane.b32.xlu1 %v3470_v54, %s3350_s13 }
 0x492   :  { %578 = vrot.lane.b32.xlu1 %v3449_v46, %s3351_s14 }
 0x496   :  { %582 = vrot.lane.b32.xlu1 %v3461_v51, %s3351_s14 }
 0x4d4   :  { %v438_v55 = vpop.xlane.xlu0 %437 }
 0x4d5   :  { %3229 = vrcp.f32 %v438_v55  ;;  %v435_v48 = vpop.xlane.xlu1 %434 }
 0x4d6   :  { %3231 = vrcp.f32 %v435_v48 }
 0x4d9   :  { %v3125_v53 = vpop.permute.xlu1 %3124 }
 0x4da   :  { %v3127_v62 = vunpack.i.h.bf16 %v3125_v53  ;;  %v3126_v5 = vunpack.i.l.bf16 %v3125_v53 }
 0x4dc   :  { %v2970_v14 = vpack.c.bf16 %v3127_v62, %v3126_v5 }
 0x4dd   :  { %v444_v56 = vpop.xlane.xlu0 %443 }
 0x4de   :  { %3233 = vrcp.f32 %v444_v56 }
 0x4df   :  { %v3230_v57 = vpop.eup %3229 }
 0x4e0   :  { %v3232_v59 = vpop.eup %3231  ;;  %v450_v60 = vmul.f32 %v3230_v57, %v438_v55 }
 0x4e1   :  { %v449_v61 = vmul.f32 %v3232_v59, %v435_v48  ;;  %v3120_v63 = vpop.permute.xlu0 %3119 }
 0x4e2   :  { %v454_v2 = vsub.f32 2.0, %v450_v60  ;;  %v3122_v6 = vunpack.i.h.bf16 %v3120_v63  ;;  %v3121_v7 = vunpack.i.l.bf16 %v3120_v63 }
 0x4e3   :  { %v453_v46 = vsub.f32 2.0, %v449_v61 }
 0x4e4   :  { %v458_v8 = vmul.f32 %v3230_v57, %v454_v2  ;;  %v2966_v12 = vpack.c.bf16 %v3122_v6, %v3121_v7 }
 0x4e5   :  { %v457_v51 = vmul.f32 %v3232_v59, %v453_v46  ;;  %v577_v32 = vpop.permute.xlu0 %576 }
 0x4e6   :  { %2967 = vmatprep.subr.bf16.mxu1 %v2966_v12  ;;  %v462_v16 = vmul.f32 %v3222_v38, %v458_v8 }
 0x4e7   :  { %v461_v15 = vmul.f32 %v3224_v39, %v457_v51  ;;  %2969 = vmatpush3.bf16.msra.mxu1 %v2966_v12 }
 0x4e8   :  { %2972 = vmatprep.subr.msk.bf16.mxu1 %vm3476_vm7, %v2970_v14  ;;  %v3234_v18 = vpop.eup %3233 }
 0x4e9   :  { %2743 = vmatprep.mubr.msk.f32.mxu1 %vm185_vm1, %v461_v15  ;;  %v452_v22 = vmul.f32 %v3234_v18, %v444_v56  ;;  %v581_v34 = vpop.permute.xlu0 %580 }
 0x4ea   :  { %2744 = vmatmul.mubr.msk.f32.vlgmr.msra.gmra.mrb[4].mxu1 %vm185_vm1, %v462_v16 }
 0x4eb   :  { %v456_v25 = vsub.f32 2.0, %v452_v22 }
 0x4ed   :  { %v460_v28 = vmul.f32 %v3234_v18, %v456_v25  ;;  %v3148_v25 = vpack.i.bf16 %v3420_v10, %v3415_v9 }
 0x4ef   :  { %v464_v31 = vmul.f32 %v3518_v42, %v460_v28 }
 0x4f0   :  { %2975 = vmatpush3.bf16.xpose.msk.msra.mxu1 %vm3476_vm7, %v2970_v14 }
 0x50a   :  { %v441_v17 = vpop.xlane.xlu1 %440 }
 0x50b   :  { %3235 = vrcp.f32 %v441_v17 }
 0x50e   :  { %v3130_v19 = vpop.permute.xlu1 %3129 }
 0x50f   :  { %v3132_v20 = vunpack.i.h.bf16 %v3130_v19  ;;  %v3131_v21 = vunpack.i.l.bf16 %v3130_v19 }
 0x511   :  { %v2976_v23 = vpack.c.bf16 %v3132_v20, %v3131_v21 }
 0x512   :  { %v579_v33 = vpop.permute.xlu1 %578 }
 0x513   :  { %2978 = vmatprep.subr.msk.bf16.mxu1 %vm3476_vm7, %v2976_v23 }
 0x514   :  { %2981 = vmatpush3.bf16.xpose.msk.msra.mxu1 %vm3476_vm7, %v2976_v23 }
 0x515   :  { %v3236_v24 = vpop.eup %3235 }
 0x516   :  { %v451_v26 = vmul.f32 %v3236_v24, %v441_v17  ;;  %v583_v35 = vpop.permute.xlu1 %582 }
 0x518   :  { %v455_v27 = vsub.f32 2.0, %v451_v26 }
 0x51a   :  { %v459_v29 = vmul.f32 %v3236_v24, %v455_v27  ;;  %v3143_v24 = vpack.i.bf16 %v3432_v13, %v3425_v11 }
 0x51c   :  { %v463_v30 = vmul.f32 %v3228_v49, %v459_v29 }
 0x51e   :  { %2746 = vmatprep.mubr.msk.f32.mxu1 %vm185_vm1, %v463_v30 }
 0x51f   :  { %2747 = vmatmul.mubr.msk.f32.gmra.mrb[6].mxu1 %vm185_vm1, %v464_v31 }
 0x520   :  { %2757 = vmatprep.mubr.msk.f32.mxu1 %vm295_vm6, %v577_v32 }
 0x523   :  { %2758 = vmatmul.mubr.msk.f32.vlgmr.msra.gmra.mrb[8].mxu1 %vm295_vm6, %v579_v33 }
 0x524   :  { %2760 = vmatprep.mubr.msk.f32.mxu1 %vm295_vm6, %v581_v34 }
 0x527   :  { %2761 = vmatmul.mubr.msk.f32.gmra.mrb[10].mxu1 %vm295_vm6, %v583_v35 }
 0x5bd   :  { %v3554_v36 = vpop.f32.mrb[4].mxu1 }
 0x5be   :  { %v3556_v37 = vpop.f32.mrb[5].mxu1 }
 0x5f2   :  { %v3558_v38 = vpop.f32.mrb[6].mxu1 }
 0x5f3   :  { %v3560_v39 = vpop.f32.mrb[7].mxu1 }
 0x5f6   :  { %v2759_v40 = vpop.f32.mrb[8].mxu1 }
 0x5f7   :  { %v694_v41 = vmul.f32 0.25, %v2759_v40  ;;  %v674_v42 = vpop.f32.mrb[9].mxu1 }
 0x5f8   :  { %v693_v43 = vmul.f32 0.25, %v674_v42 }
 0x5f9   :  { %v698_v45 = vsel %vm402_vm8, %v694_v41, %v3401_v3 }
 0x5fa   :  { %v2762_v47 = vpop.f32.mrb[10].mxu1  ;;  %v704_v49 = vsel %vm185_vm1, %v698_v45, -inf  ;;  %v697_v52 = vsel %vm401_vm9, %v693_v43, %v3384_v0 }
 0x5fb   :  { %705 = vmax.xlane.f32.xlu1 %v704_v49  ;;  %v684_v55 = vpop.f32.mrb[11].mxu1  ;;  %v701_v48 = vsel %vm185_vm1, %v697_v52, -inf  ;;  %v696_v56 = vmul.f32 0.25, %v2762_v47 }
 0x5fc   :  { %v695_v53 = vmul.f32 0.25, %v684_v55  ;;  %702 = vmax.xlane.f32.xlu0 %v701_v48 }
 0x5fd   :  { %v700_v60 = vsel %vm404_vm11, %v696_v56, %v3406_v4 }
 0x5fe   :  { %v699_v57 = vsel %vm403_vm10, %v695_v53, %v3389_v1  ;;  %v710_v61 = vsel %vm185_vm1, %v700_v60, -inf }
 0x5ff   :  { %v707_v59 = vsel %vm185_vm1, %v699_v57, -inf }
 0x600   :  { %708 = vmax.xlane.f32.xlu0 %v707_v59 }
 0x604   :  { %711 = vmax.xlane.f32.xlu0 %v710_v61 }
 0x688   :  { %v706_v62 = vpop.xlane.xlu1 %705 }
 0x689   :  { %v714_v63 = vsub.f32 %v698_v45, %v706_v62  ;;  %v703_v2 = vpop.xlane.xlu0 %702 }
 0x68a   :  { %v713_v5 = vsub.f32 %v697_v52, %v703_v2 }
 0x68b   :  { %v719_v6 = vmul.f32 1.442695, %v714_v63 }
 0x68c   :  { %v717_v7 = vmul.f32 1.442695, %v713_v5 }
 0x68d   :  { %3237 = vpow2.f32 %v719_v6  ;;  %v709_v46 = vpop.xlane.xlu0 %708 }
 0x68e   :  { %3239 = vpow2.f32 %v717_v7  ;;  %v715_v8 = vsub.f32 %v699_v57, %v709_v46 }
 0x690   :  { %v721_v12 = vmul.f32 1.442695, %v715_v8 }
 0x691   :  { %v712_v51 = vpop.xlane.xlu0 %711 }
 0x692   :  { %3241 = vpow2.f32 %v721_v12  ;;  %v716_v14 = vsub.f32 %v700_v60, %v712_v51 }
 0x694   :  { %v723_v15 = vmul.f32 1.442695, %v716_v14 }
 0x696   :  { %3243 = vpow2.f32 %v723_v15  ;;  %v3354_v15 = vmov 0.0|0.0  }
 0x697   :  { %v3238_v16 = vpop.eup %3237  ;;  %2998 = vmatprep.subr.bf16.mxu1 %v3354_v15 }
 0x698   :  { %v3240_v17 = vpop.eup %3239  ;;  %v728_v18 = vsel %vm185_vm1, %v3238_v16, 0.0 }
 0x699   :  { %729 = vadd.xlane.f32.xlu0 %v728_v18  ;;  %v725_v19 = vsel %vm185_vm1, %v3240_v17, 0.0 }
 0x69a   :  { %726 = vadd.xlane.f32.xlu1 %v725_v19 }
 0x69c   :  { %v3242_v20 = vpop.eup %3241 }
 0x69d   :  { %v731_v21 = vsel %vm185_vm1, %v3242_v20, 0.0 }
 0x69e   :  { %732 = vadd.xlane.f32.xlu1 %v731_v21 }
 0x6a0   :  { %v3581_v22 = vpop.eup %3243 }
 0x6a1   :  { %v734_v23 = vsel %vm185_vm1, %v3581_v22, 0.0 }
 0x6a2   :  { %735 = vadd.xlane.f32.xlu0 %v734_v23 }
 0x6af   :  { %3134 = vrot.lane.b32.xlu1 %v3458_v50, %s3352_s15 }
 0x6b3   :  { %3144 = vrot.lane.b32.xlu1 %v3143_v24, %s3353_s16 }
 0x6b7   :  { %3149 = vrot.lane.b32.xlu1 %v3148_v25, %s3353_s16 }
 0x6b8   :  { %3139 = vrot.lane.b32.xlu0 %v3470_v54, %s3352_s15 }
 0x6bc   :  { %1077 = vrot.lane.b32.xlu0 %v3446_v44, %s3353_s16 }
 0x726   :  { %v730_v26 = vpop.xlane.xlu0 %729 }
 0x727   :  { %3245 = vrcp.f32 %v730_v26  ;;  %v727_v50 = vpop.xlane.xlu1 %726 }
 0x728   :  { %3247 = vrcp.f32 %v727_v50 }
 0x72b   :  { %v733_v27 = vpop.xlane.xlu1 %732 }
 0x72c   :  { %3249 = vrcp.f32 %v733_v27 }
 0x72f   :  { %v3135_v54 = vpop.permute.xlu1 %3134  ;;  %v736_v28 = vpop.xlane.xlu0 %735 }
 0x730   :  { %v3137_v11 = vunpack.i.h.bf16 %v3135_v54  ;;  %v3136_v13 = vunpack.i.l.bf16 %v3135_v54  ;;  %3251 = vrcp.f32 %v736_v28 }
 0x731   :  { %v3246_v29 = vpop.eup %3245 }
 0x732   :  { %v3248_v44 = vpop.eup %3247  ;;  %v742_v30 = vmul.f32 %v3246_v29, %v730_v26  ;;  %v2982_v31 = vpack.c.bf16 %v3137_v11, %v3136_v13 }
 0x733   :  { %v741_v32 = vmul.f32 %v3248_v44, %v727_v50  ;;  %v3140_v33 = vpop.permute.xlu0 %3139  ;;  %v3145_v47 = vpop.permute.xlu1 %3144 }
 0x734   :  { %v746_v9 = vsub.f32 2.0, %v742_v30  ;;  %v3142_v10 = vunpack.i.h.bf16 %v3140_v33  ;;  %v3141_v34 = vunpack.i.l.bf16 %v3140_v33  ;;  %2983 = vmatprep.subr.bf16.mxu0 %v2982_v31  ;;  %v3147_v49 = vunpack.i.h.bf16 %v3145_v47 }
 0x735   :  { %v745_v35 = vsub.f32 2.0, %v741_v32  ;;  %2985 = vmatpush3.bf16.msra.mxu0 %v2982_v31  ;;  %v3146_v52 = vunpack.i.l.bf16 %v3145_v47  ;;  %v172_v33 = vstv %s170_s19 }
 0x736   :  { %v3250_v40 = vpop.eup %3249  ;;  %v750_v41 = vmul.f32 %v3246_v29, %v746_v9  ;;  %v2986_v42 = vpack.c.bf16 %v3142_v10, %v3141_v34  ;;  %v165_v29 = vstv %s163_s17 }
 0x737   :  { %v749_v43 = vmul.f32 %v3248_v44, %v745_v35  ;;  %v743_v45 = vmul.f32 %v3250_v40, %v733_v27  ;;  %v2990_v57 = vpack.c.bf16 %v3147_v49, %v3146_v52  ;;  %v3150_v61 = vpop.permute.xlu1 %3149 }
 0x738   :  { %2987 = vmatprep.subr.bf16.mxu0 %v2986_v42  ;;  %v754_v53 = vmul.f32 %v3238_v16, %v750_v41  ;;  %v3152_v62 = vunpack.i.h.bf16 %v3150_v61  ;;  %v3151_v63 = vunpack.i.l.bf16 %v3150_v61  ;;  %v3356_v16 = vmov 0.0  }
 0x739   :  { %v753_v55 = vmul.f32 %v3240_v17, %v749_v43  ;;  %v747_v48 = vsub.f32 2.0, %v743_v45  ;;  %2989 = vmatpush3.bf16.msra.mxu0 %v2986_v42  ;;  %2805 = vmatprep.mubr.msk.f32.mxu1 %vm3355_vm12, %v3356_v16  ;;  %v1078_v17 = vpop.permute.xlu0 %1077  ;;  %v3620_v42 = vld [vmem:[%s3910_s2 + $0x2a] sm:$0xff]  ;;  %v3625_v43 = vld [vmem:[%s3910_s2 + $0x32] sm:$0xff] }
 0x73a   :  { %v3252_v56 = vpop.eup %3251  ;;  %2991 = vmatprep.subr.bf16.mxu0 %v2990_v57  ;;  %v2994_v6 = vpack.c.bf16 %v3152_v62, %v3151_v63  ;;  %v3656_v62 = vld [vmem:[%s3910_s2 + $0x4a] ss:$0 sm:$0xff] }
 0x73b   :  { %v751_v59 = vmul.f32 %v3250_v40, %v747_v48  ;;  %v744_v60 = vmul.f32 %v3252_v56, %v736_v28  ;;  %2771 = vmatprep.mubr.msk.f32.mxu0 %vm185_vm1, %v753_v55  ;;  %v159_v28 = vlaneseq  ;;  %v3004_v55 = vpack.c.bf16 %v3625_v43, %v3620_v42 }
 0x73c   :  { %2772 = vmatmul.mubr.msk.f32.vlgmr.msra.gmra.mrb[8].mxu0 %vm185_vm1, %v754_v53  ;;  %v3639_v53 = vld [vmem:[%s3910_s2 + $0x42] sm:$0xff] }
 0x73d   :  { %v755_v2 = vmul.f32 %v3242_v20, %v751_v59  ;;  %v748_v5 = vsub.f32 2.0, %v744_v60  ;;  %2993 = vmatpush3.bf16.msra.mxu0 %v2990_v57  ;;  %v160_v11 = vshrl.u32 %v159_v28, 7  ;;  %v162_v13 = vand.u32 127, %v159_v28 }
 0x73e   :  { %2995 = vmatprep.subr.bf16.mxu0 %v2994_v6 }
 0x73f   :  { %v752_v7 = vmul.f32 %v3252_v56, %v748_v5  ;;  %2774 = vmatprep.mubr.msk.f32.mxu0 %vm185_vm1, %v755_v2  ;;  %vm164_vm13 = vcmp.eq.s32.totalorder %v160_v11, 0  ;;  %vm166_vm15 = vcmp.eq.s32.totalorder %v162_v13, %v165_v29  ;;  %vm171_vm3 = vcmp.eq.s32.totalorder %v160_v11, 1  ;;  %v3634_v56 = vld [vmem:[%s3910_s2 + $0x3a] sm:$0xff] }
 0x740   :  { %vm167_vm2 = vmand %vm164_vm13, %vm166_vm15  ;;  %vm173_vm4 = vcmp.eq.s32.totalorder %v162_v13, %v172_v33  ;;  %v3008_v59 = vpack.c.bf16 %v3639_v53, %v3634_v56 }
 0x741   :  { %v756_v46 = vmul.f32 %v3581_v22, %v752_v7  ;;  %v168_v52 = vsel %vm167_vm2, 1.0, %v3356_v16  ;;  %vm174_vm13 = vmand %vm171_vm3, %vm173_vm4 }
 0x742   :  { %v3641_v57 = vsel %vm174_vm13, 1.0, %v168_v52 }
 0x743   :  { %2775 = vmatmul.mubr.msk.f32.gmra.mrb[10].mxu0 %vm185_vm1, %v756_v46 }
 0x80f   :  { %v2773_v8 = vpop.f32.mrb[8].mxu0 }
 0x810   :  { %v847_v12 = vpop.f32.mrb[9].mxu0 }
 0x811   :  { %2781 = vmatprep.mubr.msk.f32.mxu0 %vm295_vm6, %v847_v12 }
 0x812   :  { %2782 = vmatmul.mubr.msk.f32.vlgmr.msra.gmra.mrb[12].mxu0 %vm295_vm6, %v2773_v8 }
 0x813   :  { %2997 = vmatpush3.bf16.msra.mxu0 %v2994_v6 }
 0x816   :  { %v2776_v51 = vpop.f32.mrb[10].mxu0 }
 0x817   :  { %v857_v14 = vpop.f32.mrb[11].mxu0 }
 0x818   :  { %2784 = vmatprep.mubr.msk.f32.mxu0 %vm295_vm6, %v857_v14 }
 0x819   :  { %2785 = vmatmul.mubr.msk.f32.gmra.mrb[14].mxu0 %vm295_vm6, %v2776_v51 }
 0x81a   :  { %2791 = vmatprep.mubr.msk.f32.mxu0 %vm295_vm6, %v3556_v37 }
 0x81d   :  { %2792 = vmatmul.mubr.msk.f32.vlgmr.msra.gmra.mrb[12].mxu0 %vm295_vm6, %v3554_v36 }
 0x81e   :  { %2794 = vmatprep.mubr.msk.f32.mxu0 %vm295_vm6, %v3560_v39 }
 0x821   :  { %2795 = vmatmul.mubr.msk.f32.gmra.mrb[14].mxu0 %vm295_vm6, %v3558_v38 }
 0x8f0   :  { %v2793_v18 = vpop.f32.mrb[12].mxu0 }
 0x8f1   :  { %v1081_v37 = vadd.f32 %v2793_v18, %v1078_v17  ;;  %v1057_v19 = vpop.f32.mrb[13].mxu0 }
 0x8f2   :  { %v1080_v20 = vadd.f32 %v1078_v17, %v1057_v19 }
 0x8f3   :  { %v1089_v36 = vmin.f32 %v1081_v37, 0.0  ;;  %vm1085_vm14 = vcmp.gt.f32.partialorder %v1081_v37, 0.0 }
 0x8f4   :  { %v1088_v21 = vmin.f32 %v1080_v20, 0.0  ;;  %v2796_v22 = vpop.f32.mrb[14].mxu0  ;;  %vm1084_vm0 = vcmp.gt.f32.partialorder %v1080_v20, 0.0 }
 0x8f5   :  { %v1094_v39 = vmul.f32 1.442695, %v1089_v36  ;;  %v1083_v23 = vadd.f32 %v2796_v22, %v1078_v17  ;;  %v1067_v24 = vpop.f32.mrb[15].mxu0 }
 0x8f6   :  { %v1092_v38 = vmul.f32 1.442695, %v1088_v21  ;;  %v1082_v25 = vadd.f32 %v1078_v17, %v1067_v24 }
 0x8f7   :  { %3253 = vpow2.f32 %v1094_v39  ;;  %v1091_v26 = vmin.f32 %v1083_v23, 0.0  ;;  %vm1087_vm5 = vcmp.gt.f32.partialorder %v1083_v23, 0.0 }
 0x8f8   :  { %3255 = vpow2.f32 %v1092_v38  ;;  %v1090_v50 = vmin.f32 %v1082_v25, 0.0 }
 0x8f9   :  { %v1098_v27 = vmul.f32 1.442695, %v1091_v26 }
 0x8fa   :  { %v1096_v54 = vmul.f32 1.442695, %v1090_v50 }
 0x8fb   :  { %3257 = vpow2.f32 %v1098_v27 }
 0x8fc   :  { %3259 = vpow2.f32 %v1096_v54 }
 0x901   :  { %v3254_v44 = vpop.eup %3253 }
 0x902   :  { %v3256_v30 = vpop.eup %3255  ;;  %v2512_v31 = vadd.f32 -1.0, %v3254_v44 }
 0x903   :  { %v2511_v32 = vadd.f32 -1.0, %v3256_v30 }
 0x904   :  { %v1105_v9 = vsel %vm1085_vm14, %v1081_v37, %v2512_v31  ;;  %vm1086_vm14 = vcmp.gt.f32.partialorder %v1082_v25, 0.0 }
 0x905   :  { %v3258_v10 = vpop.eup %3257  ;;  %v1104_v34 = vsel %vm1084_vm0, %v1080_v20, %v2511_v32 }
 0x906   :  { %v3260_v35 = vpop.eup %3259  ;;  %v2999_v40 = vpack.c.bf16 %v1105_v9, %v1104_v34  ;;  %v2514_v41 = vadd.f32 -1.0, %v3258_v10 }
 0x907   :  { %v2513_v45 = vadd.f32 -1.0, %v3260_v35 }
 0x908   :  { %v1107_v47 = vsel %vm1087_vm5, %v1083_v23, %v2514_v41  ;;  %3000 = vmatpush3.bf16.msra.mxu1 %v2999_v40 }
 0x909   :  { %v1106_v49 = vsel %vm1086_vm14, %v1082_v25, %v2513_v45  ;;  %3001 = vmatprep.subr.bf16.mxu1 %v3354_v15 }
 0x90a   :  { %v3002_v48 = vpack.c.bf16 %v1107_v47, %v1106_v49 }
 0x90c   :  { %3003 = vmatpush3.bf16.msra.mxu1 %v3002_v48 }
 0x90d   :  { %3005 = vmatprep.subr.bf16.mxu1 %v3004_v55 }
 0x90f   :  { %2806 = vmatmul.mubr.msk.f32.vlgmr.msra.gmra.mrb[12].mxu1 %vm185_vm1, %v3641_v57 }
 0x910   :  { %3007 = vmatpush3.bf16.msra.mxu1 %v3004_v55  ;;  %2816 = vmatprep.mubr.msk.f32.mxu1 %vm185_vm1, %v1104_v34 }
 0x911   :  { %3009 = vmatprep.subr.bf16.mxu1 %v3008_v59 }
 0x914   :  { %3011 = vmatpush3.bf16.msra.mxu1 %v3008_v59 }
 0x917   :  { %2817 = vmatmul.mubr.msk.f32.vlgmr.msra.gmra.mrb[14].mxu1 %vm185_vm1, %v1105_v9 }
 0x918   :  { %2819 = vmatprep.mubr.msk.f32.mxu1 %vm185_vm1, %v1106_v49 }
 0x91b   :  { %2820 = vmatmul.mubr.msk.f32.gmra.mrb[16].mxu1 %vm185_vm1, %v1107_v47 }
 0x9e2   :  { %v3651_v60 = vpop.f32.mrb[12].mxu1 }
 0x9e3   :  { %v2807_v61 = vpop.f32.mrb[13].mxu1 }
 0x9ea   :  { %v2818_v63 = vpop.f32.mrb[14].mxu1 }
 0x9eb   :  { %v3659_v2 = vadd.f32 %v2818_v63, %v3656_v62  ;;  %v1272_v5 = vpop.f32.mrb[15].mxu1 }
 0x9ec   :  { %v3662_v6 = vadd.f32 %v3656_v62, %v1272_v5 }
 0x9ee   :  { %v2821_v7 = vpop.f32.mrb[16].mxu1  ;;  %2830 = vmatprep.mubr.msk.f32.mxu0 %vm295_vm6, %v3662_v6  ;;  %v3668_v46 = vpack.i.bf16 %v3659_v2, %v3662_v6 }
 0x9ef   :  { %v3671_v8 = vadd.f32 %v2821_v7, %v3656_v62  ;;  %v1282_v12 = vpop.f32.mrb[17].mxu1 }
 0x9f0   :  { %v3674_v51 = vadd.f32 %v3656_v62, %v1282_v12  ;;  %3154 = vrot.lane.b32.xlu1 %v3668_v46, %s3348_s20 }
 0x9f2   :  { %v3680_v14 = vpack.i.bf16 %v3671_v8, %v3674_v51 }
 0x9f4   :  { %3159 = vrot.lane.b32.xlu0 %v3680_v14, %s3348_s20 }
 0xa62   :  { %v3155_v17 = vpop.permute.xlu1 %3154 }
 0xa63   :  { %v3157_v18 = vunpack.i.h.bf16 %v3155_v17  ;;  %v3156_v37 = vunpack.i.l.bf16 %v3155_v17 }
 0xa65   :  { %v3012_v19 = vpack.c.bf16 %v3157_v18, %v3156_v37 }
 0xa66   :  { %v3160_v20 = vpop.permute.xlu0 %3159 }
 0xa67   :  { %v3162_v36 = vunpack.i.h.bf16 %v3160_v20  ;;  %v3161_v21 = vunpack.i.l.bf16 %v3160_v20  ;;  %3014 = vmatprep.subr.msk.bf16.mxu0 %vm3476_vm7, %v3012_v19 }
 0xa68   :  { %3017 = vmatpush3.bf16.xpose.msk.msra.mxu0 %vm3476_vm7, %v3012_v19 }
 0xa69   :  { %v3018_v22 = vpack.c.bf16 %v3162_v36, %v3161_v21 }
 0xa6b   :  { %3020 = vmatprep.subr.msk.bf16.mxu0 %vm3476_vm7, %v3018_v22 }
 0xa70   :  { %3023 = vmatpush3.bf16.xpose.msk.msra.mxu0 %vm3476_vm7, %v3018_v22 }
 0xa77   :  { %2831 = vmatmul.mubr.msk.f32.vlgmr.msra.gmra.mrb[16].mxu0 %vm295_vm6, %v3659_v2 }
 0xa78   :  { %2833 = vmatprep.mubr.msk.f32.mxu0 %vm295_vm6, %v3674_v51 }
 0xa7b   :  { %2834 = vmatmul.mubr.msk.f32.gmra.mrb[18].mxu0 %vm295_vm6, %v3671_v8 }
 0xb4a   :  { %v2832_v39 = vpop.f32.mrb[16].mxu0 }
 0xb4b   :  { %v1405_v23 = vmul.f32 0.25, %v2832_v39  ;;  %v1385_v24 = vpop.f32.mrb[17].mxu0 }
 0xb4c   :  { %v1404_v38 = vmul.f32 0.25, %v1385_v24 }
 0xb4d   :  { %v1409_v25 = vsel %vm402_vm8, %v1405_v23, %v3401_v3  ;;  %v3307_v3 = vld [vmem:[%s3909_s1 + $0x18] sm:$0xff] }
 0xb4e   :  { %v2835_v26 = vpop.f32.mrb[18].mxu0  ;;  %v1415_v50 = vsel %vm185_vm1, %v1409_v25, -inf  ;;  %v1408_v27 = vsel %vm401_vm9, %v1404_v38, %v3384_v0  ;;  %v3308_v0 = vld [vmem:[%s3909_s1 + $0x10] sm:$0xff] }
 0xb4f   :  { %v1407_v54 = vmul.f32 0.25, %v2835_v26  ;;  %1416 = vmax.xlane.f32.xlu0 %v1415_v50  ;;  %v1395_v28 = vpop.f32.mrb[19].mxu0  ;;  %v1412_v11 = vsel %vm185_vm1, %v1408_v27, -inf }
 0xb50   :  { %v1406_v13 = vmul.f32 0.25, %v1395_v28  ;;  %1413 = vmax.xlane.f32.xlu1 %v1412_v11 }
 0xb51   :  { %v1411_v29 = vsel %vm404_vm11, %v1407_v54, %v3406_v4 }
 0xb52   :  { %v1421_v44 = vsel %vm185_vm1, %v1411_v29, -inf  ;;  %v1410_v30 = vsel %vm403_vm10, %v1406_v13, %v3389_v1 }
 0xb53   :  { %v1418_v31 = vsel %vm185_vm1, %v1410_v30, -inf }
 0xb54   :  { %1422 = vmax.xlane.f32.xlu1 %v1421_v44  ;;  %1419 = vmax.xlane.f32.xlu0 %v1418_v31 }
 0xbdc   :  { %v1417_v32 = vpop.xlane.xlu0 %1416 }
 0xbdd   :  { %v1425_v33 = vsub.f32 %v1409_v25, %v1417_v32  ;;  %v1414_v9 = vpop.xlane.xlu1 %1413 }
 0xbde   :  { %v1424_v10 = vsub.f32 %v1408_v27, %v1414_v9 }
 0xbdf   :  { %v1430_v34 = vmul.f32 1.442695, %v1425_v33 }
 0xbe0   :  { %v1428_v35 = vmul.f32 1.442695, %v1424_v10 }
 0xbe1   :  { %3261 = vpow2.f32 %v1430_v34  ;;  %v1420_v49 = vpop.xlane.xlu0 %1419  ;;  %v1423_v52 = vpop.xlane.xlu1 %1422 }
 0xbe2   :  { %3263 = vpow2.f32 %v1428_v35  ;;  %v1426_v55 = vsub.f32 %v1410_v30, %v1420_v49  ;;  %v1427_v48 = vsub.f32 %v1411_v29, %v1423_v52 }
 0xbe4   :  { %v1432_v59 = vmul.f32 1.442695, %v1426_v55  ;;  %v1434_v61 = vmul.f32 1.442695, %v1427_v48 }
 0xbe6   :  { %3265 = vpow2.f32 %v1432_v59 }
 0xbe7   :  { %3267 = vpow2.f32 %v1434_v61 }
 0xbeb   :  { %v3262_v40 = vpop.eup %3261 }
 0xbec   :  { %v3264_v41 = vpop.eup %3263  ;;  %v1439_v45 = vsel %vm185_vm1, %v3262_v40, 0.0 }
 0xbed   :  { %1440 = vadd.xlane.f32.xlu1 %v1439_v45  ;;  %v1436_v47 = vsel %vm185_vm1, %v3264_v41, 0.0 }
 0xbee   :  { %1437 = vadd.xlane.f32.xlu0 %v1436_v47 }
 0xbf0   :  { %v3722_v63 = vpop.eup %3265 }
 0xbf1   :  { %v3724_v5 = vpop.eup %3267  ;;  %v1442_v7 = vsel %vm185_vm1, %v3722_v63, 0.0 }
 0xbf2   :  { %v1445_v12 = vsel %vm185_vm1, %v3724_v5, 0.0 }
 0xbfe   :  { %3169 = vrot.lane.b32.xlu1 %v3680_v14, %s3349_s12 }
 0xc02   :  { %3174 = vrot.lane.b32.xlu1 %v3668_v46, %s3350_s13 }
 0xc04   :  { %3164 = vrot.lane.b32.xlu0 %v3668_v46, %s3349_s12 }
 0xc23   :  { %1443 = vadd.xlane.f32.xlu0 %v1442_v7 }
 0xc26   :  { %1446 = vadd.xlane.f32.xlu1 %v1445_v12 }
 0xc37   :  { %1579 = vrot.lane.b32.xlu1 %v3662_v6, %s3351_s14 }
 0xc39   :  { %3179 = vrot.lane.b32.xlu0 %v3680_v14, %s3350_s13 }
 0xc3b   :  { %1583 = vrot.lane.b32.xlu1 %v3674_v51, %s3351_s14 }
 0xc3d   :  { %1581 = vrot.lane.b32.xlu0 %v3659_v2, %s3351_s14 }
 0xc41   :  { %1585 = vrot.lane.b32.xlu0 %v3671_v8, %s3351_s14 }
 0xc7a   :  { %v1441_v17 = vpop.xlane.xlu1 %1440 }
 0xc7b   :  { %3269 = vrcp.f32 %v1441_v17  ;;  %v1438_v18 = vpop.xlane.xlu0 %1437 }
 0xc7c   :  { %3271 = vrcp.f32 %v1438_v18 }
 0xc7e   :  { %v3170_v37 = vpop.permute.xlu1 %3169 }
 0xc7f   :  { %v3165_v19 = vpop.permute.xlu0 %3164  ;;  %v3172_v20 = vunpack.i.h.bf16 %v3170_v37  ;;  %v3171_v6 = vunpack.i.l.bf16 %v3170_v37 }
 0xc80   :  { %v3167_v36 = vunpack.i.h.bf16 %v3165_v19  ;;  %v3166_v21 = vunpack.i.l.bf16 %v3165_v19  ;;  %v3305_v19 = vld [vmem:[%s3909_s1 + $0x8] sm:$0xff] }
 0xc81   :  { %v3028_v23 = vpack.c.bf16 %v3172_v20, %v3171_v6 }
 0xc82   :  { %v3024_v22 = vpack.c.bf16 %v3167_v36, %v3166_v21  ;;  %v3175_v39 = vpop.permute.xlu1 %3174  ;;  %v3306_v21 = vld [vmem:[%s3909_s1] sm:$0xff] }
 0xc83   :  { %v3177_v51 = vunpack.i.h.bf16 %v3175_v39  ;;  %v3176_v24 = vunpack.i.l.bf16 %v3175_v39 }
 0xc84   :  { %3025 = vmatprep.subr.bf16.mxu1 %v3024_v22 }
 0xc85   :  { %v3270_v2 = vpop.eup %3269  ;;  %3027 = vmatpush3.bf16.msra.mxu1 %v3024_v22  ;;  %v3032_v50 = vpack.c.bf16 %v3177_v51, %v3176_v24 }
 0xc86   :  { %v3272_v38 = vpop.eup %3271  ;;  %v1453_v8 = vmul.f32 %v3270_v2, %v1441_v17  ;;  %3029 = vmatprep.subr.bf16.mxu1 %v3028_v23 }
 0xc87   :  { %v1452_v25 = vmul.f32 %v3272_v38, %v1438_v18 }
 0xc88   :  { %v1457_v26 = vsub.f32 2.0, %v1453_v8 }
 0xc89   :  { %v1456_v27 = vsub.f32 2.0, %v1452_v25  ;;  %3031 = vmatpush3.bf16.msra.mxu1 %v3028_v23 }
 0xc8a   :  { %v1461_v54 = vmul.f32 %v3270_v2, %v1457_v26  ;;  %3034 = vmatprep.subr.msk.bf16.mxu1 %vm3476_vm7, %v3032_v50 }
 0xc8b   :  { %v1460_v28 = vmul.f32 %v3272_v38, %v1456_v27 }
 0xc8c   :  { %v1465_v13 = vmul.f32 %v3262_v40, %v1461_v54 }
 0xc8d   :  { %v1464_v11 = vmul.f32 %v3264_v41, %v1460_v28 }
 0xc8f   :  { %2844 = vmatprep.mubr.msk.f32.mxu1 %vm185_vm1, %v1464_v11 }
 0xc90   :  { %2845 = vmatmul.mubr.msk.f32.vlgmr.msra.gmra.mrb[18].mxu1 %vm185_vm1, %v1465_v13 }
 0xc92   :  { %3037 = vmatpush3.bf16.xpose.msk.msra.mxu1 %vm3476_vm7, %v3032_v50 }
 0xcb0   :  { %v1444_v29 = vpop.xlane.xlu0 %1443 }
 0xcb1   :  { %3273 = vrcp.f32 %v1444_v29 }
 0xcb3   :  { %v1447_v44 = vpop.xlane.xlu1 %1446 }
 0xcb4   :  { %3275 = vrcp.f32 %v1447_v44  ;;  %v3180_v30 = vpop.permute.xlu0 %3179 }
 0xcb5   :  { %v3182_v31 = vunpack.i.h.bf16 %v3180_v30  ;;  %v3181_v32 = vunpack.i.l.bf16 %v3180_v30 }
 0xcb7   :  { %v3038_v33 = vpack.c.bf16 %v3182_v31, %v3181_v32  ;;  %v1580_v55 = vpop.permute.xlu1 %1579 }
 0xcb8   :  { %v1582_v58 = vpop.permute.xlu0 %1581 }
 0xcb9   :  { %3040 = vmatprep.subr.msk.bf16.mxu1 %vm3476_vm7, %v3038_v33 }
 0xcba   :  { %3043 = vmatpush3.bf16.xpose.msk.msra.mxu1 %vm3476_vm7, %v3038_v33 }
 0xcbb   :  { %v3274_v9 = vpop.eup %3273  ;;  %3060 = vmatprep.subr.bf16.mxu1 %v3354_v15  ;;  %v1584_v48 = vpop.permute.xlu1 %1583 }
 0xcbc   :  { %v1454_v10 = vmul.f32 %v3274_v9, %v1444_v29  ;;  %v1586_v59 = vpop.permute.xlu0 %1585 }
 0xcbe   :  { %v3276_v34 = vpop.eup %3275  ;;  %v1458_v35 = vsub.f32 2.0, %v1454_v10 }
 0xcbf   :  { %v1455_v40 = vmul.f32 %v3276_v34, %v1447_v44 }
 0xcc0   :  { %v1462_v41 = vmul.f32 %v3274_v9, %v1458_v35 }
 0xcc1   :  { %v1459_v45 = vsub.f32 2.0, %v1455_v40 }
 0xcc2   :  { %v1466_v47 = vmul.f32 %v3722_v63, %v1462_v41  ;;  %v3193_v41 = vpack.i.bf16 %v3639_v53, %v3634_v56 }
 0xcc3   :  { %v1463_v49 = vmul.f32 %v3276_v34, %v1459_v45  ;;  %v3198_v45 = vpack.i.bf16 %v3625_v43, %v3620_v42 }
 0xcc4   :  { %2847 = vmatprep.mubr.msk.f32.mxu1 %vm185_vm1, %v1466_v47 }
 0xcc5   :  { %v1467_v52 = vmul.f32 %v3724_v5, %v1463_v49 }
 0xcc7   :  { %2848 = vmatmul.mubr.msk.f32.gmra.mrb[20].mxu1 %vm185_vm1, %v1467_v52 }
 0xcc8   :  { %2858 = vmatprep.mubr.msk.f32.mxu1 %vm295_vm6, %v1580_v55 }
 0xccb   :  { %2859 = vmatmul.mubr.msk.f32.vlgmr.msra.gmra.mrb[22].mxu1 %vm295_vm6, %v1582_v58 }
 0xccc   :  { %2861 = vmatprep.mubr.msk.f32.mxu1 %vm295_vm6, %v1584_v48 }
 0xccf   :  { %2862 = vmatmul.mubr.msk.f32.gmra.mrb[24].mxu1 %vm295_vm6, %v1586_v59 }
 0xcd0   :  { %2906 = vmatprep.mubr.msk.f32.mxu1 %vm3355_vm12, %v3356_v16 }
 0xd63   :  { %v3761_v61 = vpop.f32.mrb[18].mxu1 }
 0xd64   :  { %v3763_v63 = vpop.f32.mrb[19].mxu1 }
 0xd9a   :  { %v3765_v5 = vpop.f32.mrb[20].mxu1 }
 0xd9b   :  { %v3767_v7 = vpop.f32.mrb[21].mxu1 }
 0xd9e   :  { %v2860_v12 = vpop.f32.mrb[22].mxu1 }
 0xd9f   :  { %v1697_v17 = vmul.f32 0.25, %v2860_v12  ;;  %v1677_v18 = vpop.f32.mrb[23].mxu1 }
 0xda0   :  { %v1696_v37 = vmul.f32 0.25, %v1677_v18 }
 0xda1   :  { %v1701_v20 = vsel %vm402_vm8, %v1697_v17, %v3305_v19 }
 0xda2   :  { %v2863_v6 = vpop.f32.mrb[24].mxu1  ;;  %v1707_v36 = vsel %vm185_vm1, %v1701_v20, -inf  ;;  %v1700_v22 = vsel %vm401_vm9, %v1696_v37, %v3306_v21 }
 0xda3   :  { %v1699_v39 = vmul.f32 0.25, %v2863_v6  ;;  %1708 = vmax.xlane.f32.xlu0 %v1707_v36  ;;  %v1687_v23 = vpop.f32.mrb[25].mxu1  ;;  %v1704_v51 = vsel %vm185_vm1, %v1700_v22, -inf }
 0xda4   :  { %v1698_v24 = vmul.f32 0.25, %v1687_v23  ;;  %1705 = vmax.xlane.f32.xlu1 %v1704_v51 }
 0xda5   :  { %v1703_v2 = vsel %vm404_vm11, %v1699_v39, %v3307_v3 }
 0xda6   :  { %v1713_v38 = vsel %vm185_vm1, %v1703_v2, -inf  ;;  %v1702_v8 = vsel %vm403_vm10, %v1698_v24, %v3308_v0 }
 0xda7   :  { %v1710_v25 = vsel %vm185_vm1, %v1702_v8, -inf }
 0xda8   :  { %1714 = vmax.xlane.f32.xlu1 %v1713_v38  ;;  %1711 = vmax.xlane.f32.xlu0 %v1710_v25 }
 0xe30   :  { %v1709_v26 = vpop.xlane.xlu0 %1708 }
 0xe31   :  { %v1717_v50 = vsub.f32 %v1701_v20, %v1709_v26  ;;  %v1706_v27 = vpop.xlane.xlu1 %1705 }
 0xe32   :  { %v1716_v54 = vsub.f32 %v1700_v22, %v1706_v27 }
 0xe33   :  { %v1722_v28 = vmul.f32 1.442695, %v1717_v50 }
 0xe34   :  { %v1720_v4 = vmul.f32 1.442695, %v1716_v54 }
 0xe35   :  { %3277 = vpow2.f32 %v1722_v28  ;;  %v1715_v11 = vpop.xlane.xlu1 %1714  ;;  %v1712_v13 = vpop.xlane.xlu0 %1711 }
 0xe36   :  { %3279 = vpow2.f32 %v1720_v4  ;;  %v1719_v29 = vsub.f32 %v1703_v2, %v1715_v11  ;;  %v1718_v44 = vsub.f32 %v1702_v8, %v1712_v13 }
 0xe38   :  { %v1726_v30 = vmul.f32 1.442695, %v1719_v29  ;;  %v1724_v31 = vmul.f32 1.442695, %v1718_v44 }
 0xe3a   :  { %3281 = vpow2.f32 %v1726_v30  ;;  %v3819_v30 = vld [vmem:[%s3910_s2 + $0x4b] sm:$0xff] }
 0xe3b   :  { %3283 = vpow2.f32 %v1724_v31  ;;  %v3824_v31 = vld [vmem:[%s3910_s2 + $0x53] sm:$0xff] }
 0xe3f   :  { %v3278_v1 = vpop.eup %3277 }
 0xe40   :  { %v3280_v32 = vpop.eup %3279  ;;  %v1731_v33 = vsel %vm185_vm1, %v3278_v1, 0.0 }
 0xe41   :  { %1732 = vadd.xlane.f32.xlu1 %v1731_v33  ;;  %v1728_v9 = vsel %vm185_vm1, %v3280_v32, 0.0  ;;  %v3840_v33 = vld [vmem:[%s3910_s2 + $0x63] sm:$0xff] }
 0xe42   :  { %1729 = vadd.xlane.f32.xlu0 %v1728_v9 }
 0xe44   :  { %v3282_v10 = vpop.eup %3281 }
 0xe45   :  { %v3284_v34 = vpop.eup %3283  ;;  %v1737_v35 = vsel %vm185_vm1, %v3282_v10, 0.0 }
 0xe46   :  { %1738 = vadd.xlane.f32.xlu1 %v1737_v35  ;;  %v1734_v40 = vsel %vm185_vm1, %v3284_v34, 0.0 }
 0xe47   :  { %1735 = vadd.xlane.f32.xlu0 %v1734_v40 }
 0xe57   :  { %3189 = vrot.lane.b32.xlu1 %v3680_v14, %s3352_s15 }
 0xe5b   :  { %3194 = vrot.lane.b32.xlu1 %v3193_v41, %s3353_s16 }
 0xe5d   :  { %3184 = vrot.lane.b32.xlu0 %v3668_v46, %s3352_s15 }
 0xe5f   :  { %2080 = vrot.lane.b32.xlu1 %v3656_v62, %s3353_s16 }
 0xe61   :  { %3199 = vrot.lane.b32.xlu0 %v3198_v45, %s3353_s16 }
 0xece   :  { %v1733_v47 = vpop.xlane.xlu1 %1732 }
 0xecf   :  { %3285 = vrcp.f32 %v1733_v47  ;;  %v1730_v49 = vpop.xlane.xlu0 %1729 }
 0xed0   :  { %3287 = vrcp.f32 %v1730_v49 }
 0xed3   :  { %v1739_v14 = vpop.xlane.xlu1 %1738 }
 0xed4   :  { %3289 = vrcp.f32 %v1739_v14  ;;  %v1736_v46 = vpop.xlane.xlu0 %1735 }
 0xed5   :  { %3291 = vrcp.f32 %v1736_v46 }
 0xed7   :  { %v3190_v52 = vpop.permute.xlu1 %3189 }
 0xed8   :  { %v3185_v56 = vpop.permute.xlu0 %3184  ;;  %v3192_v55 = vunpack.i.h.bf16 %v3190_v52  ;;  %v3191_v42 = vunpack.i.l.bf16 %v3190_v52 }
 0xed9   :  { %v3286_v53 = vpop.eup %3285  ;;  %v3187_v43 = vunpack.i.h.bf16 %v3185_v56  ;;  %v3186_v58 = vunpack.i.l.bf16 %v3185_v56 }
 0xeda   :  { %v3288_v48 = vpop.eup %3287  ;;  %v1745_v59 = vmul.f32 %v3286_v53, %v1733_v47  ;;  %v3048_v37 = vpack.c.bf16 %v3192_v55, %v3191_v42 }
 0xedb   :  { %v1744_v12 = vmul.f32 %v3288_v48, %v1730_v49  ;;  %v3044_v17 = vpack.c.bf16 %v3187_v43, %v3186_v58  ;;  %v3195_v19 = vpop.permute.xlu1 %3194 }
 0xedc   :  { %v1749_v62 = vsub.f32 2.0, %v1745_v59  ;;  %v3200_v20 = vpop.permute.xlu0 %3199  ;;  %v3197_v21 = vunpack.i.h.bf16 %v3195_v19  ;;  %v3196_v22 = vunpack.i.l.bf16 %v3195_v19 }
 0xedd   :  { %v1748_v18 = vsub.f32 2.0, %v1744_v12  ;;  %3045 = vmatprep.subr.bf16.mxu0 %v3044_v17  ;;  %v3202_v24 = vunpack.i.h.bf16 %v3200_v20  ;;  %v3201_v3 = vunpack.i.l.bf16 %v3200_v20 }
 0xede   :  { %v3290_v6 = vpop.eup %3289  ;;  %v1753_v36 = vmul.f32 %v3286_v53, %v1749_v62  ;;  %3047 = vmatpush3.bf16.msra.mxu0 %v3044_v17  ;;  %v3052_v38 = vpack.c.bf16 %v3197_v21, %v3196_v22  ;;  %v2182_v21 = vld [vmem:[%s3910_s2 + $0x73] sm:$0xff] }
 0xedf   :  { %v3292_v39 = vpop.eup %3291  ;;  %v1752_v23 = vmul.f32 %v3288_v48, %v1748_v18  ;;  %v1747_v51 = vmul.f32 %v3290_v6, %v1739_v14  ;;  %3049 = vmatprep.subr.bf16.mxu0 %v3048_v37  ;;  %v3056_v27 = vpack.c.bf16 %v3202_v24, %v3201_v3  ;;  %v3203_v3 = vpack.i.bf16 %v3824_v31, %v3819_v30 }
 0xee0   :  { %v1746_v2 = vmul.f32 %v3292_v39, %v1736_v46  ;;  %v1757_v26 = vmul.f32 %v3278_v1, %v1753_v36  ;;  %v3073_v1 = vpack.c.bf16 %v3824_v31, %v3819_v30  ;;  %v2181_v36 = vld [vmem:[%s3910_s2 + $0x6b] sm:$0xff] }
 0xee1   :  { %v1756_v0 = vmul.f32 %v3280_v32, %v1752_v23  ;;  %v1751_v8 = vsub.f32 2.0, %v1747_v51  ;;  %v3835_v32 = vld [vmem:[%s3910_s2 + $0x5b] sm:$0xff]  ;;  %v2184_v51 = vld [vmem:[%s3910_s2 + $0x83] sm:$0xff]  ;;  %3204 = vrot.lane.b32.xlu0 %v3203_v3, %s3348_s20 }
 0xee2   :  { %v1750_v25 = vsub.f32 2.0, %v1746_v2  ;;  %3051 = vmatpush3.bf16.msra.mxu0 %v3048_v37  ;;  %v2183_v23 = vld [vmem:[%s3910_s2 + $0x7b] sm:$0xff]  ;;  %v3208_v2 = vpack.i.bf16 %v3840_v33, %v3835_v32 }
 0xee3   :  { %v1755_v50 = vmul.f32 %v3290_v6, %v1751_v8  ;;  %2872 = vmatprep.mubr.msk.f32.mxu0 %vm185_vm1, %v1756_v0  ;;  %3053 = vmatprep.subr.bf16.mxu0 %v3052_v38  ;;  %v3070_v24 = vpack.c.bf16 %v2184_v51, %v2183_v23 }
 0xee4   :  { %v1754_v54 = vmul.f32 %v3292_v39, %v1750_v25  ;;  %v3067_v39 = vpack.c.bf16 %v2182_v21, %v2181_v36  ;;  %3209 = vrot.lane.b32.xlu1 %v3208_v2, %s3348_s20 }
 0xee5   :  { %v1759_v28 = vmul.f32 %v3282_v10, %v1755_v50  ;;  %2873 = vmatmul.mubr.msk.f32.vlgmr.msra.gmra.mrb[20].mxu0 %vm185_vm1, %v1757_v26 }
 0xee6   :  { %v1758_v4 = vmul.f32 %v3284_v34, %v1754_v54  ;;  %3055 = vmatpush3.bf16.msra.mxu0 %v3052_v38 }
 0xee7   :  { %3057 = vmatprep.subr.bf16.mxu0 %v3056_v27 }
 0xee8   :  { %2875 = vmatprep.mubr.msk.f32.mxu0 %vm185_vm1, %v1758_v4  ;;  %v2562_v4 = vld [vmem:[%s3910_s2 + $0x6b] ss:$0 sm:$0xff] }
 0xee9   :  { %2876 = vmatmul.mubr.msk.f32.gmra.mrb[22].mxu0 %vm185_vm1, %v1759_v28  ;;  %2365 = vrot.lane.b32.xlu0 %v2562_v4, %s3348_s20 }
 0xf53   :  { %v3205_v0 = vpop.permute.xlu0 %3204 }
 0xf54   :  { %v3207_v25 = vunpack.i.h.bf16 %v3205_v0  ;;  %v3206_v26 = vunpack.i.l.bf16 %v3205_v0 }
 0xf56   :  { %v3079_v54 = vpack.c.bf16 %v3207_v25, %v3206_v26 }
 0xfb8   :  { %v2874_v11 = vpop.f32.mrb[20].mxu0 }
 0xfb9   :  { %v1850_v13 = vpop.f32.mrb[21].mxu0 }
 0xfba   :  { %2882 = vmatprep.mubr.msk.f32.mxu0 %vm295_vm6, %v1850_v13 }
 0xfbb   :  { %2883 = vmatmul.mubr.msk.f32.vlgmr.msra.gmra.mrb[24].mxu0 %vm295_vm6, %v2874_v11 }
 0xfbc   :  { %3059 = vmatpush3.bf16.msra.mxu0 %v3056_v27  ;;  %v2877_v29 = vpop.f32.mrb[22].mxu0 }
 0xfbd   :  { %v1860_v44 = vpop.f32.mrb[23].mxu0  ;;  %3072 = vmatprep.subr.bf16.mxu0 %v3354_v15 }
 0xfbe   :  { %2885 = vmatprep.mubr.msk.f32.mxu0 %vm295_vm6, %v1860_v44 }
 0xfbf   :  { %2886 = vmatmul.mubr.msk.f32.gmra.mrb[26].mxu0 %vm295_vm6, %v2877_v29 }
 0xfc0   :  { %2892 = vmatprep.mubr.msk.f32.mxu0 %vm295_vm6, %v3763_v63  ;;  %v3076_v63 = vpack.c.bf16 %v3840_v33, %v3835_v32  ;;  %v2366_v33 = vpop.permute.xlu0 %2365 }
 0xfc3   :  { %2893 = vmatmul.mubr.msk.f32.vlgmr.msra.gmra.mrb[24].mxu0 %vm295_vm6, %v3761_v61  ;;  %v2081_v61 = vpop.permute.xlu1 %2080 }
 0xfc4   :  { %2895 = vmatprep.mubr.msk.f32.mxu0 %vm295_vm6, %v3767_v7  ;;  %3074 = vmatpush3.bf16.msra.mxu0 %v3073_v1 }
 0xfc5   :  { %3075 = vmatprep.subr.bf16.mxu0 %v3354_v15 }
 0xfc7   :  { %2896 = vmatmul.mubr.msk.f32.gmra.mrb[26].mxu0 %vm295_vm6, %v3765_v5  ;;  %v3210_v8 = vpop.permute.xlu1 %3209 }
 0xfc8   :  { %3077 = vmatpush3.bf16.msra.mxu0 %v3076_v63  ;;  %2928 = vmatprep.mubr.msk.f32.mxu0 %vm3355_vm12, %v3356_v16  ;;  %v3212_v50 = vunpack.i.h.bf16 %v3210_v8  ;;  %v3211_v27 = vunpack.i.l.bf16 %v3210_v8 }
 0xfca   :  { %v3082_v28 = vpack.c.bf16 %v3212_v50, %v3211_v27 }
 0xfcb   :  { %2929 = vmatmul.mubr.msk.f32.vlgmr.msra.gmra.mrb[28].mxu0 %vm185_vm1, %v3651_v60 }
0x1096   :  { %v2894_v9 = vpop.f32.mrb[24].mxu0 }
0x1097   :  { %v2084_v10 = vadd.f32 %v2894_v9, %v2081_v61  ;;  %v2060_v7 = vpop.f32.mrb[25].mxu0 }
0x1098   :  { %v2083_v34 = vadd.f32 %v2081_v61, %v2060_v7 }
0x1099   :  { %v2092_v35 = vmin.f32 %v2084_v10, 0.0  ;;  %vm2088_vm6 = vcmp.gt.f32.partialorder %v2084_v10, 0.0 }
0x109a   :  { %v2091_v40 = vmin.f32 %v2083_v34, 0.0  ;;  %v2897_v41 = vpop.f32.mrb[26].mxu0  ;;  %vm2087_vm7 = vcmp.gt.f32.partialorder %v2083_v34, 0.0 }
0x109b   :  { %v2097_v45 = vmul.f32 1.442695, %v2092_v35  ;;  %v2086_v47 = vadd.f32 %v2897_v41, %v2081_v61  ;;  %v2070_v49 = vpop.f32.mrb[27].mxu0 }
0x109c   :  { %v2095_v14 = vmul.f32 1.442695, %v2091_v40  ;;  %v2085_v5 = vadd.f32 %v2081_v61, %v2070_v49 }
0x109d   :  { %3293 = vpow2.f32 %v2097_v45  ;;  %v2094_v46 = vmin.f32 %v2086_v47, 0.0  ;;  %vm2090_vm8 = vcmp.gt.f32.partialorder %v2086_v47, 0.0 }
0x109e   :  { %3295 = vpow2.f32 %v2095_v14  ;;  %v2093_v52 = vmin.f32 %v2085_v5, 0.0  ;;  %v3855_v56 = vpop.f32.mrb[28].mxu0  ;;  %vm2089_vm9 = vcmp.gt.f32.partialorder %v2085_v5, 0.0 }
0x109f   :  { %v2101_v60 = vmul.f32 1.442695, %v2094_v46  ;;  %v2930_v53 = vpop.f32.mrb[29].mxu0 }
0x10a0   :  { %v2099_v55 = vmul.f32 1.442695, %v2093_v52 }
0x10a1   :  { %3297 = vpow2.f32 %v2101_v60 }
0x10a2   :  { %3299 = vpow2.f32 %v2099_v55 }
0x10a7   :  { %v3294_v42 = vpop.eup %3293 }
0x10a8   :  { %v3296_v43 = vpop.eup %3295  ;;  %v2554_v58 = vadd.f32 -1.0, %v3294_v42 }
0x10a9   :  { %v2553_v48 = vadd.f32 -1.0, %v3296_v43 }
0x10aa   :  { %v2108_v59 = vsel %vm2088_vm6, %v2084_v10, %v2554_v58 }
0x10ab   :  { %v3298_v12 = vpop.eup %3297  ;;  %v2107_v17 = vsel %vm2087_vm7, %v2083_v34, %v2553_v48 }
0x10ac   :  { %v3300_v62 = vpop.eup %3299  ;;  %v3061_v18 = vpack.c.bf16 %v2108_v59, %v2107_v17  ;;  %v2556_v37 = vadd.f32 -1.0, %v3298_v12 }
0x10ad   :  { %v2555_v19 = vadd.f32 -1.0, %v3300_v62 }
0x10ae   :  { %v2110_v20 = vsel %vm2090_vm8, %v2086_v47, %v2556_v37  ;;  %3062 = vmatpush3.bf16.msra.mxu1 %v3061_v18 }
0x10af   :  { %v2109_v6 = vsel %vm2089_vm9, %v2085_v5, %v2555_v19  ;;  %3063 = vmatprep.subr.bf16.mxu1 %v3354_v15 }
0x10b0   :  { %v3064_v22 = vpack.c.bf16 %v2110_v20, %v2109_v6 }
0x10b2   :  { %3065 = vmatpush3.bf16.msra.mxu1 %v3064_v22 }
0x10b3   :  { %3066 = vmatprep.subr.bf16.mxu1 %v3354_v15 }
0x10b5   :  { %2907 = vmatmul.mubr.msk.f32.vlgmr.msra.gmra.mrb[26].mxu1 %vm185_vm1, %v3641_v57 }
0x10b6   :  { %3068 = vmatpush3.bf16.msra.mxu1 %v3067_v39  ;;  %2917 = vmatprep.mubr.msk.f32.mxu1 %vm3355_vm12, %v3356_v16 }
0x10b7   :  { %3069 = vmatprep.subr.bf16.mxu1 %v3354_v15 }
0x10ba   :  { %3071 = vmatpush3.bf16.msra.mxu1 %v3070_v24 }
0x10bb   :  { %3078 = vmatprep.subr.bf16.mxu1 %v3354_v15 }
0x1188   :  { %v2177_v57 = vpop.f32.mrb[26].mxu1 }
0x1189   :  { %v2908_v38 = vpop.f32.mrb[27].mxu1  ;;  %2918 = vmatmul.mubr.msk.f32.vlgmr.msra.gmra.mrb[28].mxu1 %vm185_vm1, %v2177_v57 }
0x118a   :  { %2939 = vmatprep.mubr.msk.f32.mxu1 %vm3355_vm12, %v3356_v16  ;;  %3080 = vmatpush3.bf16.msra.mxu1 %v3079_v54  ;;  %v2560_v16 = vld [vmem:[%s3910_s2 + $0x8b] ss:$0 sm:$0xff]  ;;  %s3357_s2 = smov [#allocation4]   ;;  %vm2448_vm12 = vcmask 25600  }
0x118b   :  { %3081 = vmatprep.subr.bf16.mxu1 %v3354_v15  ;;  %s2456_s20 = sshll.u32 %s3357_s2, 4  ;;  %s2457_s20 = int_to_ptr.vmem [resolvable:$true] %s2456_s20 }
0x118c   :  { %s3321_s30 = scalar_lea.vmem %s2457_s20, 32  ;;  %p3326_p6 = scmp.lt.s32.totalorder %s2457_s20, %s2457_s20 }
0x118d   :  { %p3322_p5 = scmp.ne.s32.totalorder %s2457_s20, %s3321_s30  ;;  %p3327_p7 = scmp.lt.s32.totalorder %s3321_s30, %s3321_s30 }
0x118e   :  { %3083 = vmatpush3.bf16.msra.mxu1 %v3082_v28 }
0x118f   :  { %p3328_p8 = por %p3327_p7, %p3326_p6 }
0x1191   :  { %p3329_p9 = pnand %p3328_p8, %p3322_p5 }
0x125c   :  { %v2254_v11 = vpop.f32.mrb[28].mxu1 }
0x125d   :  { %v2328_v13 = vadd.f32 %v3855_v56, %v2254_v11  ;;  %v2919_v29 = vpop.f32.mrb[29].mxu1 }
0x125f   :  { %v2336_v44 = vadd.f32 %v2560_v16, %v2328_v13 }
0x1261   :  { %v2338_v30 = vmin.f32 %v2336_v44, 0.0  ;;  %vm2337_vm10 = vcmp.gt.f32.partialorder %v2336_v44, 0.0 }
0x1263   :  { %v2339_v31 = vmul.f32 1.442695, %v2338_v30 }
0x1265   :  { %3301 = vpow2.f32 %v2339_v31 }
0x126f   :  { %v3302_v15 = vpop.eup %3301 }
0x1270   :  { %v2561_v1 = vadd.f32 -1.0, %v3302_v15 }
0x1272   :  { %v2342_v32 = vsel %vm2337_vm10, %v2336_v44, %v2561_v1 }
0x1273   :  { %2940 = vmatmul.mubr.msk.f32.vlgmr.msra.gmra.mrb[30].mxu1 %vm185_vm1, %v2342_v32 }
0x1346   :  { %v2437_v63 = vpop.f32.mrb[30].mxu1 }
0x1347   :  { %v2438_v61 = vadd.f32 %v2437_v63, %v2366_v33  ;;  %v2941_v9 = vpop.f32.mrb[31].mxu1 }
0x1349   :  { %v2442_v10 = vmin.f32 %v2438_v61, 0.0  ;;  %vm2441_vm11 = vcmp.gt.f32.partialorder %v2438_v61, 0.0 }
0x134b   :  { %v2443_v7 = vmul.f32 1.442695, %v2442_v10 }
0x134d   :  { %3303 = vpow2.f32 %v2443_v7 }
0x1357   :  { %v3304_v34 = vpop.eup %3303 }
0x1358   :  { %v2564_v35 = vadd.f32 -1.0, %v3304_v34 }
0x135a   :  { %v2446_v40 = vsel %vm2441_vm11, %v2438_v61, %v2564_v35 }
0x135b   :  { %v2447_v41 = vmul.f32 1999853.4, %v2446_v40 }
0x135d   :  { %2449 = vst.msk [vmem:[#allocation4] sm:$0x3] %vm2448_vm12, %v2447_v41 }
0x135e   :  { %3332 = shalt.err (!%p3329_p9)
}
0x135f   :  { %s3333_s6 = scalar_lea.hbm %s3911_s3, 32 }
0x1360   :  { %p3334_p10 = scmp.ne.s32.totalorder %s3911_s3, %s3333_s6  ;;  %p3337_p11 = scmp.lt.u32.totalorder %s3333_s6, %s3911_s3 }
0x1362   :  { %p3339_p12 = pnand %p3337_p11, %p3334_p10 }
0x1364   :  { %3342 = shalt.err (!%p3339_p12)
}
0x1365   :  { %2459 = dma.vmem_to_hbm [thread:$0]  %s2457_s20, 32, %s3911_s3, [#allocation5]  }
0x1366   :  { %3345 = dma.done.wait [#allocation5], 32  }
0x1367   :  { %3346 = vsyncadd [#allocation5], 4294967264 }
0x1368   :  { %2463 = vsyncpa [#allocation5], 1 }

</bundles_post_ra>
